<compile_context>
chip_gen: v6e
topology: v6e:2x2x1
jax: 0.10.0
libtpu: 0.0.40
codegen_flags: <defaults>
</compile_context>

<pallas_src>
import functools

import jax
import jax.numpy as jnp
from jax.experimental import pallas as pl
from jax.experimental.pallas import tpu as pltpu


# --------------------------------- kernel ----------------------------------

def spec_encoder_kernel(x_ref, g_ref, noise_ref, mask_ref,
                        w_pre_ref, b_pre_ref,
                        w_cond_t_ref, w_cond_s_ref, b_cond_t_ref, b_cond_s_ref,
                        w_in_t_ref, w_in_s_ref, b_in_t_ref, b_in_s_ref,
                        w_res_ref, b_res_ref, w_skip_ref, b_skip_ref,
                        w_pm_ref, b_pm_ref, w_pl_ref, b_pl_ref,
                        z_ref, m_ref, logs_ref,
                        *, hidden, kernel_size, dilation_rate, n_layers):
    H = hidden
    K = kernel_size
    T = x_ref.shape[-1]
    f32 = jnp.float32
    bf16 = jnp.bfloat16

    mask = mask_ref[...]                                         # (1, T) f32
    t_idx = jax.lax.broadcasted_iota(jnp.int32, (1, T), 1)

    # pre: 1x1 conv == channel matmul (bf16 MXU, f32 accumulate)
    h = (jnp.dot(w_pre_ref[...], x_ref[...], preferred_element_type=f32)
         + b_pre_ref[...]) * mask                                # (H, T) f32

    # WN cond_layer (1x1 conv on time-invariant g): tiny, done as a VPU
    # multiply + lane reduce; result is a (L*H, 1) column that broadcasts
    # along lanes.
    g_row = g_ref[...]                                           # (1, gin) f32
    cond_t = (jnp.sum(w_cond_t_ref[...] * g_row, axis=1, keepdims=True)
              + b_cond_t_ref[...])                               # (L*H, 1)
    cond_s = (jnp.sum(w_cond_s_ref[...] * g_row, axis=1, keepdims=True)
              + b_cond_s_ref[...])                               # (L*H, 1)

    def shifted(hh, off):
        """out[:, t] = hh[:, t + off], zero outside [0, T). `off` static."""
        if off == 0:
            return hh
        if abs(off) >= T:
            return jnp.zeros_like(hh)
        rolled = pltpu.roll(hh, shift=(-off) % T, axis=1)        # XLU lane roll
        if off > 0:
            valid = (t_idx < (T - off)).astype(f32)              # zero the tail
        else:
            valid = (t_idx >= (-off)).astype(f32)                # zero the head
        return rolled * valid                                    # kill wrap-around

    output = jnp.zeros((H, T), f32)
    for i in range(n_layers):
        d = dilation_rate ** i
        # Dilated conv ("same" padding, odd K): gather the K time-shifted
        # copies of h and fuse the K taps into one wide matmul.
        taps = [shifted(h, (k - (K - 1) // 2) * d).astype(bf16) for k in range(K)]
        x_cat = jnp.concatenate(taps, axis=0)                    # (K*H, T) bf16

        t_in = (jnp.dot(w_in_t_ref[i], x_cat, preferred_element_type=f32)
                + b_in_t_ref[i] + cond_t[i * H:(i + 1) * H, :])
        s_in = (jnp.dot(w_in_s_ref[i], x_cat, preferred_element_type=f32)
                + b_in_s_ref[i] + cond_s[i * H:(i + 1) * H, :])
        # fused_add_tanh_sigmoid_multiply (f32 elementwise)
        acts = (jnp.tanh(t_in) * jax.nn.sigmoid(s_in)).astype(bf16)   # (H, T)

        if i < n_layers - 1:   # last WN layer has no residual branch
            res = (jnp.dot(w_res_ref[i], acts, preferred_element_type=f32)
                   + b_res_ref[i])
            h = (h + res) * mask
        output = output + (jnp.dot(w_skip_ref[i], acts, preferred_element_type=f32)
                           + b_skip_ref[i])

    output = (output * mask).astype(bf16)

    # proj: 1x1 conv, pre-split in the wrapper into m / logs halves
    m = (jnp.dot(w_pm_ref[...], output, preferred_element_type=f32)
         + b_pm_ref[...]) * mask
    logs = (jnp.dot(w_pl_ref[...], output, preferred_element_type=f32)
            + b_pl_ref[...]) * mask
    z = (m + noise_ref[...] * jnp.exp(logs)) * mask

    z_ref[...] = z
    m_ref[...] = m
    logs_ref[...] = logs


# -------------------------------- wrapper -----------------------------------

def spec_encoder_forward(x_nct, x_lengths, g_nc1, noise_nct, params, cfg):
    """x_nct: (B, spec_channels, T); g_nc1: (B, gin, 1); noise: (B, out, T).
    Returns (z, m, logs, x_mask) in PyTorch layout: (B,out,T)x3 and (B,1,T)."""
    B, Cs, T = x_nct.shape
    H = cfg["hidden_channels"]
    L = cfg["n_layers"]
    K = cfg["kernel_size"]
    Co = cfg["out_channels"]
    gin = cfg["gin_channels"]
    assert K % 2 == 1, "kernel_size must be odd ('same' padding in WN)"

    f32, bf16 = jnp.float32, jnp.bfloat16

    # native (B, C, T) layout kept everywhere: no transposes of x / noise / outs
    x_b = x_nct.astype(bf16)                    # feeds a matmul -> bf16 halves DMA
    noise_f = noise_nct.astype(f32)             # elementwise only -> keep f32
    g_row = jnp.transpose(g_nc1, (0, 2, 1)).astype(f32)        # (B, 1, gin), tiny
    # sequence_mask computed here (lane-dense), passed in, and returned as x_mask
    x_mask = (jnp.arange(T, dtype=jnp.int32)[None, None, :]
              < x_lengths.astype(jnp.int32)[:, None, None]).astype(f32)   # (B,1,T)

    wb = lambda a: a.astype(bf16)               # matmul weights in bf16
    weights = [
        wb(params["w_pre"]), params["b_pre"],
        params["w_cond_t"], params["w_cond_s"],
        params["b_cond_t"], params["b_cond_s"],
        wb(params["w_in_t"]), wb(params["w_in_s"]),
        params["b_in_t"], params["b_in_s"],
        wb(params["w_res"]), params["b_res"],
        wb(params["w_skip"]), params["b_skip"],
        wb(params["w_proj_m"]), params["b_proj_m"],
        wb(params["w_proj_logs"]), params["b_proj_logs"],
    ]

    def full_spec(shape):
        nd = len(shape)
        return pl.BlockSpec(shape, lambda b, _nd=nd: (0,) * _nd)

    in_specs = [
        pl.BlockSpec((None, Cs, T), lambda b: (b, 0, 0)),        # x
        pl.BlockSpec((None, 1, gin), lambda b: (b, 0, 0)),       # g (row vector)
        pl.BlockSpec((None, Co, T), lambda b: (b, 0, 0)),        # noise
        pl.BlockSpec((None, 1, T), lambda b: (b, 0, 0)),         # mask
    ] + [full_spec(w.shape) for w in weights]

    out_specs = [
        pl.BlockSpec((None, Co, T), lambda b: (b, 0, 0)),        # z
        pl.BlockSpec((None, Co, T), lambda b: (b, 0, 0)),        # m
        pl.BlockSpec((None, Co, T), lambda b: (b, 0, 0)),        # logs
    ]
    out_shape = tuple(jax.ShapeDtypeStruct((B, Co, T), f32) for _ in range(3))

    kern = functools.partial(
        spec_encoder_kernel, hidden=H, kernel_size=K,
        dilation_rate=cfg["dilation_rate"], n_layers=L)

    grid_spec = pltpu.PrefetchScalarGridSpec(
        num_scalar_prefetch=0, grid=(B,),
        in_specs=in_specs, out_specs=out_specs)

    z, m, logs = pl.pallas_call(
        kern, out_shape=out_shape, grid_spec=grid_spec,
        compiler_params=pltpu.CompilerParams(
            dimension_semantics=("parallel",),          # batch iters independent
            vmem_limit_bytes=48 * 1024 * 1024),
    )(x_b, g_row, noise_f, x_mask, *weights)

    return z, m, logs, x_mask


# ----------------------------- params / reference ---------------------------

def init_params(key, cfg):
    """Weights in channels-first 1x1-conv layout (out_ch, in_ch), pre-split:
    in_layer -> (tanh, sigmoid) halves, res_skip -> (res, skip) halves,
    proj -> (m, logs) halves, cond -> (tanh, sigmoid) halves.
    The last layer's w_res/b_res entries are unused (Torch WN: last res_skip
    conv has only skip outputs)."""
    Cs = cfg["spec_channels"]
    H = cfg["hidden_channels"]
    L = cfg["n_layers"]
    K = cfg["kernel_size"]
    Co = cfg["out_channels"]
    gin = cfg["gin_channels"]
    ks = jax.random.split(key, 18)
    s = 0.1
    n = lambda k, shape: s * jax.random.normal(k, shape, jnp.float32)
    return {
        "w_pre": n(ks[0], (H, Cs)),         "b_pre": n(ks[1], (H, 1)),
        "w_cond_t": n(ks[2], (L * H, gin)), "w_cond_s": n(ks[3], (L * H, gin)),
        "b_cond_t": n(ks[4], (L * H, 1)),   "b_cond_s": n(ks[5], (L * H, 1)),
        "w_in_t": n(ks[6], (L, H, K * H)),  "w_in_s": n(ks[7], (L, H, K * H)),
        "b_in_t": n(ks[8], (L, H, 1)),      "b_in_s": n(ks[9], (L, H, 1)),
        "w_res": n(ks[10], (L, H, H)),      "b_res": n(ks[11], (L, H, 1)),
        "w_skip": n(ks[12], (L, H, H)),     "b_skip": n(ks[13], (L, H, 1)),
        "w_proj_m": n(ks[14], (Co, H)),     "b_proj_m": n(ks[15], (Co, 1)),
        "w_proj_logs": n(ks[16], (Co, H)),  "b_proj_logs": n(ks[17], (Co, 1)),
    }


def _shift_time_ref(x, off):
    """out[..., t] = x[..., t + off] with zero padding, x: (B, C, T)."""
    B, C, T = x.shape
    if off == 0:
        return x
    if off > 0:
        return jnp.pad(x[:, :, off:], ((0, 0), (0, 0), (0, off)))
    return jnp.pad(x[:, :, :T + off], ((0, 0), (0, 0), (-off, 0)))


def reference_forward(x_nct, x_lengths, g_nc1, noise_nct, p, cfg):
    """Pure-JAX f32 reference mirroring the PyTorch SpecEncoder semantics."""
    H = cfg["hidden_channels"]
    L = cfg["n_layers"]
    K = cfg["kernel_size"]
    dil = cfg["dilation_rate"]
    B, Cs, T = x_nct.shape
    x = x_nct.astype(jnp.float32)
    noise = noise_nct.astype(jnp.float32)
    g = g_nc1[:, :, 0].astype(jnp.float32)                         # (B, gin)
    mask = (jnp.arange(T)[None, None, :] < x_lengths[:, None, None]
            ).astype(jnp.float32)                                  # (B, 1, T)
    h = (jnp.einsum('hc,bct->bht', p["w_pre"], x) + p["b_pre"][None]) * mask
    cond_t = jnp.einsum('hg,bg->bh', p["w_cond_t"], g)[:, :, None] + p["b_cond_t"][None]
    cond_s = jnp.einsum('hg,bg->bh', p["w_cond_s"], g)[:, :, None] + p["b_cond_s"][None]
    out = jnp.zeros_like(h)
    for i in range(L):
        d = dil ** i
        x_cat = jnp.concatenate(
            [_shift_time_ref(h, (k - (K - 1) // 2) * d) for k in range(K)], axis=1)
        t_in = (jnp.einsum('hk,bkt->bht', p["w_in_t"][i], x_cat)
                + p["b_in_t"][i][None] + cond_t[:, i * H:(i + 1) * H])
        s_in = (jnp.einsum('hk,bkt->bht', p["w_in_s"][i], x_cat)
                + p["b_in_s"][i][None] + cond_s[:, i * H:(i + 1) * H])
        acts = jnp.tanh(t_in) * jax.nn.sigmoid(s_in)
        if i < L - 1:
            res = jnp.einsum('hk,bkt->bht', p["w_res"][i], acts) + p["b_res"][i][None]
            h = (h + res) * mask
        out = out + jnp.einsum('hk,bkt->bht', p["w_skip"][i], acts) + p["b_skip"][i][None]
    out = out * mask
    m = (jnp.einsum('oh,bht->bot', p["w_proj_m"], out) + p["b_proj_m"][None]) * mask
    logs = (jnp.einsum('oh,bht->bot', p["w_proj_logs"], out)
            + p["b_proj_logs"][None]) * mask
    z = (m + noise * jnp.exp(logs)) * mask
    return z, m, logs, mask


# --------------------------------- main --------------------------------------

if __name__ == "__main__":
    cfg = dict(filter_length=14, out_channels=4, hidden_channels=16,
               kernel_size=3, dilation_rate=2, n_layers=3, gin_channels=8)
    cfg["spec_channels"] = cfg["filter_length"] // 2 + 1   # = 8
    B, T = 2, 128   # T multiple of 128 -> lane-dense stores / aligned lane rolls

    key = jax.random.PRNGKey(0)
    kx, kg, kn, kp = jax.random.split(key, 4)
    x = jax.random.normal(kx, (B, cfg["spec_channels"], T), jnp.float32)
    x_lengths = jnp.array([T, T - 37], jnp.int32)
    g = jax.random.normal(kg, (B, cfg["gin_channels"], 1), jnp.float32)
    # torch.randn_like(m): standard-normal noise generated outside, fed into kernel
    noise = jax.random.normal(kn, (B, cfg["out_channels"], T), jnp.float32)
    params = init_params(kp, cfg)

    z, m, logs, x_mask = spec_encoder_forward(x, x_lengths, g, noise, params, cfg)
    jax.block_until_ready((z, m, logs, x_mask))

    z_r, m_r, logs_r, mask_r = reference_forward(x, x_lengths, g, noise, params, cfg)
    assert z.shape == (B, cfg["out_channels"], T) and x_mask.shape == (B, 1, T)
    # bf16 MXU matmuls inside the kernel -> looser tolerance vs the f32 reference
    assert jnp.allclose(z, z_r, atol=1e-2, rtol=1e-2), "z mismatch"
    assert jnp.allclose(m, m_r, atol=1e-2, rtol=1e-2), "m mismatch"
    assert jnp.allclose(logs, logs_r, atol=1e-2, rtol=1e-2), "logs mismatch"
    assert jnp.allclose(x_mask, mask_r), "mask mismatch"
    print("KERNEL_OK")
</pallas_src>

<mosaic_0001>
module attributes {stable_mosaic.version = 11 : i64} {
  func.func @spec_encoder_kernel(%arg0: i32, %arg1: memref<1x8x128xbf16, #tpu.memory_space<vmem>>, %arg2: memref<1x1x8xf32, #tpu.memory_space<vmem>>, %arg3: memref<1x4x128xf32, #tpu.memory_space<vmem>>, %arg4: memref<1x1x128xf32, #tpu.memory_space<vmem>>, %arg5: memref<16x8xbf16, #tpu.memory_space<vmem>>, %arg6: memref<16x1xf32, #tpu.memory_space<vmem>>, %arg7: memref<48x8xf32, #tpu.memory_space<vmem>>, %arg8: memref<48x8xf32, #tpu.memory_space<vmem>>, %arg9: memref<48x1xf32, #tpu.memory_space<vmem>>, %arg10: memref<48x1xf32, #tpu.memory_space<vmem>>, %arg11: memref<3x16x48xbf16, #tpu.memory_space<vmem>>, %arg12: memref<3x16x48xbf16, #tpu.memory_space<vmem>>, %arg13: memref<3x16x1xf32, #tpu.memory_space<vmem>>, %arg14: memref<3x16x1xf32, #tpu.memory_space<vmem>>, %arg15: memref<3x16x16xbf16, #tpu.memory_space<vmem>>, %arg16: memref<3x16x1xf32, #tpu.memory_space<vmem>>, %arg17: memref<3x16x16xbf16, #tpu.memory_space<vmem>>, %arg18: memref<3x16x1xf32, #tpu.memory_space<vmem>>, %arg19: memref<4x16xbf16, #tpu.memory_space<vmem>>, %arg20: memref<4x1xf32, #tpu.memory_space<vmem>>, %arg21: memref<4x16xbf16, #tpu.memory_space<vmem>>, %arg22: memref<4x1xf32, #tpu.memory_space<vmem>>, %arg23: memref<1x4x128xf32, #tpu.memory_space<vmem>>, %arg24: memref<1x4x128xf32, #tpu.memory_space<vmem>>, %arg25: memref<1x4x128xf32, #tpu.memory_space<vmem>>) attributes {dimension_semantics = [#tpu.dimension_semantics<parallel>], iteration_bounds = array<i64: 2>, scalar_prefetch = 0 : i64, scratch_operands = 0 : i64, tpu.core_type = #tpu.core_type<tc>, window_params = [{transform_indices = @transform_0, window_bounds = array<i64: 1, 8, 128>}, {transform_indices = @transform_1, window_bounds = array<i64: 1, 1, 8>}, {transform_indices = @transform_2, window_bounds = array<i64: 1, 4, 128>}, {transform_indices = @transform_3, window_bounds = array<i64: 1, 1, 128>}, {pipeline_mode = #tpu.pipeline_mode<synchronous>, transform_indices = @transform_4, window_bounds = array<i64: 16, 8>}, {pipeline_mode = #tpu.pipeline_mode<synchronous>, transform_indices = @transform_5, window_bounds = array<i64: 16, 1>}, {pipeline_mode = #tpu.pipeline_mode<synchronous>, transform_indices = @transform_6, window_bounds = array<i64: 48, 8>}, {pipeline_mode = #tpu.pipeline_mode<synchronous>, transform_indices = @transform_7, window_bounds = array<i64: 48, 8>}, {pipeline_mode = #tpu.pipeline_mode<synchronous>, transform_indices = @transform_8, window_bounds = array<i64: 48, 1>}, {pipeline_mode = #tpu.pipeline_mode<synchronous>, transform_indices = @transform_9, window_bounds = array<i64: 48, 1>}, {pipeline_mode = #tpu.pipeline_mode<synchronous>, transform_indices = @transform_10, window_bounds = array<i64: 3, 16, 48>}, {pipeline_mode = #tpu.pipeline_mode<synchronous>, transform_indices = @transform_11, window_bounds = array<i64: 3, 16, 48>}, {pipeline_mode = #tpu.pipeline_mode<synchronous>, transform_indices = @transform_12, window_bounds = array<i64: 3, 16, 1>}, {pipeline_mode = #tpu.pipeline_mode<synchronous>, transform_indices = @transform_13, window_bounds = array<i64: 3, 16, 1>}, {pipeline_mode = #tpu.pipeline_mode<synchronous>, transform_indices = @transform_14, window_bounds = array<i64: 3, 16, 16>}, {pipeline_mode = #tpu.pipeline_mode<synchronous>, transform_indices = @transform_15, window_bounds = array<i64: 3, 16, 1>}, {pipeline_mode = #tpu.pipeline_mode<synchronous>, transform_indices = @transform_16, window_bounds = array<i64: 3, 16, 16>}, {pipeline_mode = #tpu.pipeline_mode<synchronous>, transform_indices = @transform_17, window_bounds = array<i64: 3, 16, 1>}, {pipeline_mode = #tpu.pipeline_mode<synchronous>, transform_indices = @transform_18, window_bounds = array<i64: 4, 16>}, {pipeline_mode = #tpu.pipeline_mode<synchronous>, transform_indices = @transform_19, window_bounds = array<i64: 4, 1>}, {pipeline_mode = #tpu.pipeline_mode<synchronous>, transform_indices = @transform_20, window_bounds = array<i64: 4, 16>}, {pipeline_mode = #tpu.pipeline_mode<synchronous>, transform_indices = @transform_21, window_bounds = array<i64: 4, 1>}, {transform_indices = @transform_22, window_bounds = array<i64: 1, 4, 128>}, {transform_indices = @transform_23, window_bounds = array<i64: 1, 4, 128>}, {transform_indices = @transform_24, window_bounds = array<i64: 1, 4, 128>}]} {
    %c0 = arith.constant 0 : index
    %c0_0 = arith.constant 0 : index
    %c0_1 = arith.constant 0 : index
    %0 = vector.load %arg4[%c0, %c0_0, %c0_1] : memref<1x1x128xf32, #tpu.memory_space<vmem>>, vector<1x1x128xf32>
    %1 = vector.shape_cast %0 : vector<1x1x128xf32> to vector<1x128xf32>
    %2 = tpu.iota {dimensions = array<i32: 1>} : vector<1x128xi32>
    %c0_2 = arith.constant 0 : index
    %c0_3 = arith.constant 0 : index
    %3 = vector.load %arg5[%c0_2, %c0_3] : memref<16x8xbf16, #tpu.memory_space<vmem>>, vector<16x8xbf16>
    %c0_4 = arith.constant 0 : index
    %c0_5 = arith.constant 0 : index
    %c0_6 = arith.constant 0 : index
    %4 = vector.load %arg1[%c0_4, %c0_5, %c0_6] : memref<1x8x128xbf16, #tpu.memory_space<vmem>>, vector<1x8x128xbf16>
    %5 = vector.shape_cast %4 : vector<1x8x128xbf16> to vector<8x128xbf16>
    %cst = arith.constant dense<0.000000e+00> : vector<16x128xf32>
    %6 = tpu.matmul %3, %5, %cst {dimension_numbers = #tpu.dot_dimension_numbers<[1], [0], [0], [1], [0, 0, 1, 1], [], []>} : vector<16x8xbf16>, vector<8x128xbf16>, vector<16x128xf32> -> vector<16x128xf32>
    %c0_7 = arith.constant 0 : index
    %c0_8 = arith.constant 0 : index
    %7 = vector.load %arg6[%c0_7, %c0_8] : memref<16x1xf32, #tpu.memory_space<vmem>>, vector<16x1xf32>
    %8 = vector.broadcast %7 : vector<16x1xf32> to vector<16x128xf32>
    %9 = arith.addf %6, %8 : vector<16x128xf32>
    %10 = vector.broadcast %1 : vector<1x128xf32> to vector<16x128xf32>
    %11 = arith.mulf %9, %10 : vector<16x128xf32>
    %c0_9 = arith.constant 0 : index
    %c0_10 = arith.constant 0 : index
    %c0_11 = arith.constant 0 : index
    %12 = vector.load %arg2[%c0_9, %c0_10, %c0_11] : memref<1x1x8xf32, #tpu.memory_space<vmem>>, vector<1x1x8xf32>
    %13 = vector.shape_cast %12 : vector<1x1x8xf32> to vector<1x8xf32>
    %c0_12 = arith.constant 0 : index
    %c0_13 = arith.constant 0 : index
    %14 = vector.load %arg7[%c0_12, %c0_13] : memref<48x8xf32, #tpu.memory_space<vmem>>, vector<48x8xf32>
    %15 = vector.broadcast %13 : vector<1x8xf32> to vector<48x8xf32>
    %16 = arith.mulf %14, %15 : vector<48x8xf32>
    %cst_14 = arith.constant dense<0.000000e+00> : vector<48xf32>
    %17 = vector.multi_reduction <add>, %16, %cst_14 [1] : vector<48x8xf32> to vector<48xf32>
    %18 = vector.shape_cast %17 : vector<48xf32> to vector<48x1xf32>
    %c0_15 = arith.constant 0 : index
    %c0_16 = arith.constant 0 : index
    %19 = vector.load %arg9[%c0_15, %c0_16] : memref<48x1xf32, #tpu.memory_space<vmem>>, vector<48x1xf32>
    %20 = arith.addf %18, %19 : vector<48x1xf32>
    %c0_17 = arith.constant 0 : index
    %c0_18 = arith.constant 0 : index
    %21 = vector.load %arg8[%c0_17, %c0_18] : memref<48x8xf32, #tpu.memory_space<vmem>>, vector<48x8xf32>
    %22 = vector.broadcast %13 : vector<1x8xf32> to vector<48x8xf32>
    %23 = arith.mulf %21, %22 : vector<48x8xf32>
    %cst_19 = arith.constant dense<0.000000e+00> : vector<48xf32>
    %24 = vector.multi_reduction <add>, %23, %cst_19 [1] : vector<48x8xf32> to vector<48xf32>
    %25 = vector.shape_cast %24 : vector<48xf32> to vector<48x1xf32>
    %c0_20 = arith.constant 0 : index
    %c0_21 = arith.constant 0 : index
    %26 = vector.load %arg10[%c0_20, %c0_21] : memref<48x1xf32, #tpu.memory_space<vmem>>, vector<48x1xf32>
    %27 = arith.addf %25, %26 : vector<48x1xf32>
    %cst_22 = arith.constant 0.000000e+00 : f32
    %28 = vector.broadcast %cst_22 : f32 to vector<16x128xf32>
    %c1_i32 = arith.constant 1 : i32
    %29 = tpu.dynamic_rotate %11 by %c1_i32 dim 1 : vector<16x128xf32>, i32 -> vector<16x128xf32>
    %c1_i32_23 = arith.constant 1 : i32
    %30 = vector.broadcast %c1_i32_23 : i32 to vector<1x128xi32>
    %31 = arith.cmpi sge, %2, %30 : vector<1x128xi32>
    %32 = arith.extui %31 : vector<1x128xi1> to vector<1x128xi32>
    %33 = arith.sitofp %32 : vector<1x128xi32> to vector<1x128xf32>
    %34 = vector.broadcast %33 : vector<1x128xf32> to vector<16x128xf32>
    %35 = arith.mulf %29, %34 : vector<16x128xf32>
    %36 = arith.truncf %35 : vector<16x128xf32> to vector<16x128xbf16>
    %37 = arith.truncf %11 : vector<16x128xf32> to vector<16x128xbf16>
    %c127_i32 = arith.constant 127 : i32
    %38 = tpu.dynamic_rotate %11 by %c127_i32 dim 1 : vector<16x128xf32>, i32 -> vector<16x128xf32>
    %c127_i32_24 = arith.constant 127 : i32
    %39 = vector.broadcast %c127_i32_24 : i32 to vector<1x128xi32>
    %40 = arith.cmpi slt, %2, %39 : vector<1x128xi32>
    %41 = arith.extui %40 : vector<1x128xi1> to vector<1x128xi32>
    %42 = arith.sitofp %41 : vector<1x128xi32> to vector<1x128xf32>
    %43 = vector.broadcast %42 : vector<1x128xf32> to vector<16x128xf32>
    %44 = arith.mulf %38, %43 : vector<16x128xf32>
    %45 = arith.truncf %44 : vector<16x128xf32> to vector<16x128xbf16>
    %46 = tpu.concatenate %36, %37, %45 in 0 : vector<16x128xbf16>, vector<16x128xbf16>, vector<16x128xbf16> -> vector<48x128xbf16>
    %c0_25 = arith.constant 0 : index
    %c0_26 = arith.constant 0 : index
    %c0_27 = arith.constant 0 : index
    %47 = vector.load %arg11[%c0_25, %c0_26, %c0_27] : memref<3x16x48xbf16, #tpu.memory_space<vmem>>, vector<1x16x48xbf16>
    %48 = vector.shape_cast %47 : vector<1x16x48xbf16> to vector<16x48xbf16>
    %cst_28 = arith.constant dense<0.000000e+00> : vector<16x128xf32>
    %49 = tpu.matmul %48, %46, %cst_28 {dimension_numbers = #tpu.dot_dimension_numbers<[1], [0], [0], [1], [0, 0, 1, 1], [], []>} : vector<16x48xbf16>, vector<48x128xbf16>, vector<16x128xf32> -> vector<16x128xf32>
    %c0_29 = arith.constant 0 : index
    %c0_30 = arith.constant 0 : index
    %c0_31 = arith.constant 0 : index
    %50 = vector.load %arg13[%c0_29, %c0_30, %c0_31] : memref<3x16x1xf32, #tpu.memory_space<vmem>>, vector<1x16x1xf32>
    %51 = vector.shape_cast %50 : vector<1x16x1xf32> to vector<16x1xf32>
    %52 = vector.broadcast %51 : vector<16x1xf32> to vector<16x128xf32>
    %53 = arith.addf %49, %52 : vector<16x128xf32>
    %54 = vector.extract_strided_slice %20 {offsets = [0, 0], sizes = [16, 1], strides = [1, 1]} : vector<48x1xf32> to vector<16x1xf32>
    %55 = vector.broadcast %54 : vector<16x1xf32> to vector<16x128xf32>
    %56 = arith.addf %53, %55 : vector<16x128xf32>
    %c0_32 = arith.constant 0 : index
    %c0_33 = arith.constant 0 : index
    %c0_34 = arith.constant 0 : index
    %57 = vector.load %arg12[%c0_32, %c0_33, %c0_34] : memref<3x16x48xbf16, #tpu.memory_space<vmem>>, vector<1x16x48xbf16>
    %58 = vector.shape_cast %57 : vector<1x16x48xbf16> to vector<16x48xbf16>
    %cst_35 = arith.constant dense<0.000000e+00> : vector<16x128xf32>
    %59 = tpu.matmul %58, %46, %cst_35 {dimension_numbers = #tpu.dot_dimension_numbers<[1], [0], [0], [1], [0, 0, 1, 1], [], []>} : vector<16x48xbf16>, vector<48x128xbf16>, vector<16x128xf32> -> vector<16x128xf32>
    %c0_36 = arith.constant 0 : index
    %c0_37 = arith.constant 0 : index
    %c0_38 = arith.constant 0 : index
    %60 = vector.load %arg14[%c0_36, %c0_37, %c0_38] : memref<3x16x1xf32, #tpu.memory_space<vmem>>, vector<1x16x1xf32>
    %61 = vector.shape_cast %60 : vector<1x16x1xf32> to vector<16x1xf32>
    %62 = vector.broadcast %61 : vector<16x1xf32> to vector<16x128xf32>
    %63 = arith.addf %59, %62 : vector<16x128xf32>
    %64 = vector.extract_strided_slice %27 {offsets = [0, 0], sizes = [16, 1], strides = [1, 1]} : vector<48x1xf32> to vector<16x1xf32>
    %65 = vector.broadcast %64 : vector<16x1xf32> to vector<16x128xf32>
    %66 = arith.addf %63, %65 : vector<16x128xf32>
    %67 = math.tanh %56 : vector<16x128xf32>
    %68 = arith.negf %66 : vector<16x128xf32>
    %69 = math.exp %68 : vector<16x128xf32>
    %cst_39 = arith.constant 1.000000e+00 : f32
    %70 = vector.broadcast %cst_39 : f32 to vector<16x128xf32>
    %71 = arith.addf %70, %69 : vector<16x128xf32>
    %72 = arith.divf %70, %71 : vector<16x128xf32>
    %73 = arith.mulf %67, %72 : vector<16x128xf32>
    %74 = arith.truncf %73 : vector<16x128xf32> to vector<16x128xbf16>
    %c0_40 = arith.constant 0 : index
    %c0_41 = arith.constant 0 : index
    %c0_42 = arith.constant 0 : index
    %75 = vector.load %arg15[%c0_40, %c0_41, %c0_42] : memref<3x16x16xbf16, #tpu.memory_space<vmem>>, vector<1x16x16xbf16>
    %76 = vector.shape_cast %75 : vector<1x16x16xbf16> to vector<16x16xbf16>
    %cst_43 = arith.constant dense<0.000000e+00> : vector<16x128xf32>
    %77 = tpu.matmul %76, %74, %cst_43 {dimension_numbers = #tpu.dot_dimension_numbers<[1], [0], [0], [1], [0, 0, 1, 1], [], []>} : vector<16x16xbf16>, vector<16x128xbf16>, vector<16x128xf32> -> vector<16x128xf32>
    %c0_44 = arith.constant 0 : index
    %c0_45 = arith.constant 0 : index
    %c0_46 = arith.constant 0 : index
    %78 = vector.load %arg16[%c0_44, %c0_45, %c0_46] : memref<3x16x1xf32, #tpu.memory_space<vmem>>, vector<1x16x1xf32>
    %79 = vector.shape_cast %78 : vector<1x16x1xf32> to vector<16x1xf32>
    %80 = vector.broadcast %79 : vector<16x1xf32> to vector<16x128xf32>
    %81 = arith.addf %77, %80 : vector<16x128xf32>
    %82 = arith.addf %11, %81 : vector<16x128xf32>
    %83 = vector.broadcast %1 : vector<1x128xf32> to vector<16x128xf32>
    %84 = arith.mulf %82, %83 : vector<16x128xf32>
    %c0_47 = arith.constant 0 : index
    %c0_48 = arith.constant 0 : index
    %c0_49 = arith.constant 0 : index
    %85 = vector.load %arg17[%c0_47, %c0_48, %c0_49] : memref<3x16x16xbf16, #tpu.memory_space<vmem>>, vector<1x16x16xbf16>
    %86 = vector.shape_cast %85 : vector<1x16x16xbf16> to vector<16x16xbf16>
    %cst_50 = arith.constant dense<0.000000e+00> : vector<16x128xf32>
    %87 = tpu.matmul %86, %74, %cst_50 {dimension_numbers = #tpu.dot_dimension_numbers<[1], [0], [0], [1], [0, 0, 1, 1], [], []>} : vector<16x16xbf16>, vector<16x128xbf16>, vector<16x128xf32> -> vector<16x128xf32>
    %c0_51 = arith.constant 0 : index
    %c0_52 = arith.constant 0 : index
    %c0_53 = arith.constant 0 : index
    %88 = vector.load %arg18[%c0_51, %c0_52, %c0_53] : memref<3x16x1xf32, #tpu.memory_space<vmem>>, vector<1x16x1xf32>
    %89 = vector.shape_cast %88 : vector<1x16x1xf32> to vector<16x1xf32>
    %90 = vector.broadcast %89 : vector<16x1xf32> to vector<16x128xf32>
    %91 = arith.addf %87, %90 : vector<16x128xf32>
    %92 = arith.addf %28, %91 : vector<16x128xf32>
    %c2_i32 = arith.constant 2 : i32
    %93 = tpu.dynamic_rotate %84 by %c2_i32 dim 1 : vector<16x128xf32>, i32 -> vector<16x128xf32>
    %c2_i32_54 = arith.constant 2 : i32
    %94 = vector.broadcast %c2_i32_54 : i32 to vector<1x128xi32>
    %95 = arith.cmpi sge, %2, %94 : vector<1x128xi32>
    %96 = arith.extui %95 : vector<1x128xi1> to vector<1x128xi32>
    %97 = arith.sitofp %96 : vector<1x128xi32> to vector<1x128xf32>
    %98 = vector.broadcast %97 : vector<1x128xf32> to vector<16x128xf32>
    %99 = arith.mulf %93, %98 : vector<16x128xf32>
    %100 = arith.truncf %99 : vector<16x128xf32> to vector<16x128xbf16>
    %101 = arith.truncf %84 : vector<16x128xf32> to vector<16x128xbf16>
    %c126_i32 = arith.constant 126 : i32
    %102 = tpu.dynamic_rotate %84 by %c126_i32 dim 1 : vector<16x128xf32>, i32 -> vector<16x128xf32>
    %c126_i32_55 = arith.constant 126 : i32
    %103 = vector.broadcast %c126_i32_55 : i32 to vector<1x128xi32>
    %104 = arith.cmpi slt, %2, %103 : vector<1x128xi32>
    %105 = arith.extui %104 : vector<1x128xi1> to vector<1x128xi32>
    %106 = arith.sitofp %105 : vector<1x128xi32> to vector<1x128xf32>
    %107 = vector.broadcast %106 : vector<1x128xf32> to vector<16x128xf32>
    %108 = arith.mulf %102, %107 : vector<16x128xf32>
    %109 = arith.truncf %108 : vector<16x128xf32> to vector<16x128xbf16>
    %110 = tpu.concatenate %100, %101, %109 in 0 : vector<16x128xbf16>, vector<16x128xbf16>, vector<16x128xbf16> -> vector<48x128xbf16>
    %c1 = arith.constant 1 : index
    %c0_56 = arith.constant 0 : index
    %c0_57 = arith.constant 0 : index
    %111 = vector.load %arg11[%c1, %c0_56, %c0_57] : memref<3x16x48xbf16, #tpu.memory_space<vmem>>, vector<1x16x48xbf16>
    %112 = vector.shape_cast %111 : vector<1x16x48xbf16> to vector<16x48xbf16>
    %cst_58 = arith.constant dense<0.000000e+00> : vector<16x128xf32>
    %113 = tpu.matmul %112, %110, %cst_58 {dimension_numbers = #tpu.dot_dimension_numbers<[1], [0], [0], [1], [0, 0, 1, 1], [], []>} : vector<16x48xbf16>, vector<48x128xbf16>, vector<16x128xf32> -> vector<16x128xf32>
    %c1_59 = arith.constant 1 : index
    %c0_60 = arith.constant 0 : index
    %c0_61 = arith.constant 0 : index
    %114 = vector.load %arg13[%c1_59, %c0_60, %c0_61] : memref<3x16x1xf32, #tpu.memory_space<vmem>>, vector<1x16x1xf32>
    %115 = vector.shape_cast %114 : vector<1x16x1xf32> to vector<16x1xf32>
    %116 = vector.broadcast %115 : vector<16x1xf32> to vector<16x128xf32>
    %117 = arith.addf %113, %116 : vector<16x128xf32>
    %118 = vector.extract_strided_slice %20 {offsets = [16, 0], sizes = [16, 1], strides = [1, 1]} : vector<48x1xf32> to vector<16x1xf32>
    %119 = vector.broadcast %118 : vector<16x1xf32> to vector<16x128xf32>
    %120 = arith.addf %117, %119 : vector<16x128xf32>
    %c1_62 = arith.constant 1 : index
    %c0_63 = arith.constant 0 : index
    %c0_64 = arith.constant 0 : index
    %121 = vector.load %arg12[%c1_62, %c0_63, %c0_64] : memref<3x16x48xbf16, #tpu.memory_space<vmem>>, vector<1x16x48xbf16>
    %122 = vector.shape_cast %121 : vector<1x16x48xbf16> to vector<16x48xbf16>
    %cst_65 = arith.constant dense<0.000000e+00> : vector<16x128xf32>
    %123 = tpu.matmul %122, %110, %cst_65 {dimension_numbers = #tpu.dot_dimension_numbers<[1], [0], [0], [1], [0, 0, 1, 1], [], []>} : vector<16x48xbf16>, vector<48x128xbf16>, vector<16x128xf32> -> vector<16x128xf32>
    %c1_66 = arith.constant 1 : index
    %c0_67 = arith.constant 0 : index
    %c0_68 = arith.constant 0 : index
    %124 = vector.load %arg14[%c1_66, %c0_67, %c0_68] : memref<3x16x1xf32, #tpu.memory_space<vmem>>, vector<1x16x1xf32>
    %125 = vector.shape_cast %124 : vector<1x16x1xf32> to vector<16x1xf32>
    %126 = vector.broadcast %125 : vector<16x1xf32> to vector<16x128xf32>
    %127 = arith.addf %123, %126 : vector<16x128xf32>
    %128 = vector.extract_strided_slice %27 {offsets = [16, 0], sizes = [16, 1], strides = [1, 1]} : vector<48x1xf32> to vector<16x1xf32>
    %129 = vector.broadcast %128 : vector<16x1xf32> to vector<16x128xf32>
    %130 = arith.addf %127, %129 : vector<16x128xf32>
    %131 = math.tanh %120 : vector<16x128xf32>
    %132 = arith.negf %130 : vector<16x128xf32>
    %133 = math.exp %132 : vector<16x128xf32>
    %cst_69 = arith.constant 1.000000e+00 : f32
    %134 = vector.broadcast %cst_69 : f32 to vector<16x128xf32>
    %135 = arith.addf %134, %133 : vector<16x128xf32>
    %136 = arith.divf %134, %135 : vector<16x128xf32>
    %137 = arith.mulf %131, %136 : vector<16x128xf32>
    %138 = arith.truncf %137 : vector<16x128xf32> to vector<16x128xbf16>
    %c1_70 = arith.constant 1 : index
    %c0_71 = arith.constant 0 : index
    %c0_72 = arith.constant 0 : index
    %139 = vector.load %arg15[%c1_70, %c0_71, %c0_72] : memref<3x16x16xbf16, #tpu.memory_space<vmem>>, vector<1x16x16xbf16>
    %140 = vector.shape_cast %139 : vector<1x16x16xbf16> to vector<16x16xbf16>
    %cst_73 = arith.constant dense<0.000000e+00> : vector<16x128xf32>
    %141 = tpu.matmul %140, %138, %cst_73 {dimension_numbers = #tpu.dot_dimension_numbers<[1], [0], [0], [1], [0, 0, 1, 1], [], []>} : vector<16x16xbf16>, vector<16x128xbf16>, vector<16x128xf32> -> vector<16x128xf32>
    %c1_74 = arith.constant 1 : index
    %c0_75 = arith.constant 0 : index
    %c0_76 = arith.constant 0 : index
    %142 = vector.load %arg16[%c1_74, %c0_75, %c0_76] : memref<3x16x1xf32, #tpu.memory_space<vmem>>, vector<1x16x1xf32>
    %143 = vector.shape_cast %142 : vector<1x16x1xf32> to vector<16x1xf32>
    %144 = vector.broadcast %143 : vector<16x1xf32> to vector<16x128xf32>
    %145 = arith.addf %141, %144 : vector<16x128xf32>
    %146 = arith.addf %84, %145 : vector<16x128xf32>
    %147 = vector.broadcast %1 : vector<1x128xf32> to vector<16x128xf32>
    %148 = arith.mulf %146, %147 : vector<16x128xf32>
    %c1_77 = arith.constant 1 : index
    %c0_78 = arith.constant 0 : index
    %c0_79 = arith.constant 0 : index
    %149 = vector.load %arg17[%c1_77, %c0_78, %c0_79] : memref<3x16x16xbf16, #tpu.memory_space<vmem>>, vector<1x16x16xbf16>
    %150 = vector.shape_cast %149 : vector<1x16x16xbf16> to vector<16x16xbf16>
    %cst_80 = arith.constant dense<0.000000e+00> : vector<16x128xf32>
    %151 = tpu.matmul %150, %138, %cst_80 {dimension_numbers = #tpu.dot_dimension_numbers<[1], [0], [0], [1], [0, 0, 1, 1], [], []>} : vector<16x16xbf16>, vector<16x128xbf16>, vector<16x128xf32> -> vector<16x128xf32>
    %c1_81 = arith.constant 1 : index
    %c0_82 = arith.constant 0 : index
    %c0_83 = arith.constant 0 : index
    %152 = vector.load %arg18[%c1_81, %c0_82, %c0_83] : memref<3x16x1xf32, #tpu.memory_space<vmem>>, vector<1x16x1xf32>
    %153 = vector.shape_cast %152 : vector<1x16x1xf32> to vector<16x1xf32>
    %154 = vector.broadcast %153 : vector<16x1xf32> to vector<16x128xf32>
    %155 = arith.addf %151, %154 : vector<16x128xf32>
    %156 = arith.addf %92, %155 : vector<16x128xf32>
    %c4_i32 = arith.constant 4 : i32
    %157 = tpu.dynamic_rotate %148 by %c4_i32 dim 1 : vector<16x128xf32>, i32 -> vector<16x128xf32>
    %c4_i32_84 = arith.constant 4 : i32
    %158 = vector.broadcast %c4_i32_84 : i32 to vector<1x128xi32>
    %159 = arith.cmpi sge, %2, %158 : vector<1x128xi32>
    %160 = arith.extui %159 : vector<1x128xi1> to vector<1x128xi32>
    %161 = arith.sitofp %160 : vector<1x128xi32> to vector<1x128xf32>
    %162 = vector.broadcast %161 : vector<1x128xf32> to vector<16x128xf32>
    %163 = arith.mulf %157, %162 : vector<16x128xf32>
    %164 = arith.truncf %163 : vector<16x128xf32> to vector<16x128xbf16>
    %165 = arith.truncf %148 : vector<16x128xf32> to vector<16x128xbf16>
    %c124_i32 = arith.constant 124 : i32
    %166 = tpu.dynamic_rotate %148 by %c124_i32 dim 1 : vector<16x128xf32>, i32 -> vector<16x128xf32>
    %c124_i32_85 = arith.constant 124 : i32
    %167 = vector.broadcast %c124_i32_85 : i32 to vector<1x128xi32>
    %168 = arith.cmpi slt, %2, %167 : vector<1x128xi32>
    %169 = arith.extui %168 : vector<1x128xi1> to vector<1x128xi32>
    %170 = arith.sitofp %169 : vector<1x128xi32> to vector<1x128xf32>
    %171 = vector.broadcast %170 : vector<1x128xf32> to vector<16x128xf32>
    %172 = arith.mulf %166, %171 : vector<16x128xf32>
    %173 = arith.truncf %172 : vector<16x128xf32> to vector<16x128xbf16>
    %174 = tpu.concatenate %164, %165, %173 in 0 : vector<16x128xbf16>, vector<16x128xbf16>, vector<16x128xbf16> -> vector<48x128xbf16>
    %c2 = arith.constant 2 : index
    %c0_86 = arith.constant 0 : index
    %c0_87 = arith.constant 0 : index
    %175 = vector.load %arg11[%c2, %c0_86, %c0_87] : memref<3x16x48xbf16, #tpu.memory_space<vmem>>, vector<1x16x48xbf16>
    %176 = vector.shape_cast %175 : vector<1x16x48xbf16> to vector<16x48xbf16>
    %cst_88 = arith.constant dense<0.000000e+00> : vector<16x128xf32>
    %177 = tpu.matmul %176, %174, %cst_88 {dimension_numbers = #tpu.dot_dimension_numbers<[1], [0], [0], [1], [0, 0, 1, 1], [], []>} : vector<16x48xbf16>, vector<48x128xbf16>, vector<16x128xf32> -> vector<16x128xf32>
    %c2_89 = arith.constant 2 : index
    %c0_90 = arith.constant 0 : index
    %c0_91 = arith.constant 0 : index
    %178 = vector.load %arg13[%c2_89, %c0_90, %c0_91] : memref<3x16x1xf32, #tpu.memory_space<vmem>>, vector<1x16x1xf32>
    %179 = vector.shape_cast %178 : vector<1x16x1xf32> to vector<16x1xf32>
    %180 = vector.broadcast %179 : vector<16x1xf32> to vector<16x128xf32>
    %181 = arith.addf %177, %180 : vector<16x128xf32>
    %182 = vector.extract_strided_slice %20 {offsets = [32, 0], sizes = [16, 1], strides = [1, 1]} : vector<48x1xf32> to vector<16x1xf32>
    %183 = vector.broadcast %182 : vector<16x1xf32> to vector<16x128xf32>
    %184 = arith.addf %181, %183 : vector<16x128xf32>
    %c2_92 = arith.constant 2 : index
    %c0_93 = arith.constant 0 : index
    %c0_94 = arith.constant 0 : index
    %185 = vector.load %arg12[%c2_92, %c0_93, %c0_94] : memref<3x16x48xbf16, #tpu.memory_space<vmem>>, vector<1x16x48xbf16>
    %186 = vector.shape_cast %185 : vector<1x16x48xbf16> to vector<16x48xbf16>
    %cst_95 = arith.constant dense<0.000000e+00> : vector<16x128xf32>
    %187 = tpu.matmul %186, %174, %cst_95 {dimension_numbers = #tpu.dot_dimension_numbers<[1], [0], [0], [1], [0, 0, 1, 1], [], []>} : vector<16x48xbf16>, vector<48x128xbf16>, vector<16x128xf32> -> vector<16x128xf32>
    %c2_96 = arith.constant 2 : index
    %c0_97 = arith.constant 0 : index
    %c0_98 = arith.constant 0 : index
    %188 = vector.load %arg14[%c2_96, %c0_97, %c0_98] : memref<3x16x1xf32, #tpu.memory_space<vmem>>, vector<1x16x1xf32>
    %189 = vector.shape_cast %188 : vector<1x16x1xf32> to vector<16x1xf32>
    %190 = vector.broadcast %189 : vector<16x1xf32> to vector<16x128xf32>
    %191 = arith.addf %187, %190 : vector<16x128xf32>
    %192 = vector.extract_strided_slice %27 {offsets = [32, 0], sizes = [16, 1], strides = [1, 1]} : vector<48x1xf32> to vector<16x1xf32>
    %193 = vector.broadcast %192 : vector<16x1xf32> to vector<16x128xf32>
    %194 = arith.addf %191, %193 : vector<16x128xf32>
    %195 = math.tanh %184 : vector<16x128xf32>
    %196 = arith.negf %194 : vector<16x128xf32>
    %197 = math.exp %196 : vector<16x128xf32>
    %cst_99 = arith.constant 1.000000e+00 : f32
    %198 = vector.broadcast %cst_99 : f32 to vector<16x128xf32>
    %199 = arith.addf %198, %197 : vector<16x128xf32>
    %200 = arith.divf %198, %199 : vector<16x128xf32>
    %201 = arith.mulf %195, %200 : vector<16x128xf32>
    %202 = arith.truncf %201 : vector<16x128xf32> to vector<16x128xbf16>
    %c2_100 = arith.constant 2 : index
    %c0_101 = arith.constant 0 : index
    %c0_102 = arith.constant 0 : index
    %203 = vector.load %arg17[%c2_100, %c0_101, %c0_102] : memref<3x16x16xbf16, #tpu.memory_space<vmem>>, vector<1x16x16xbf16>
    %204 = vector.shape_cast %203 : vector<1x16x16xbf16> to vector<16x16xbf16>
    %cst_103 = arith.constant dense<0.000000e+00> : vector<16x128xf32>
    %205 = tpu.matmul %204, %202, %cst_103 {dimension_numbers = #tpu.dot_dimension_numbers<[1], [0], [0], [1], [0, 0, 1, 1], [], []>} : vector<16x16xbf16>, vector<16x128xbf16>, vector<16x128xf32> -> vector<16x128xf32>
    %c2_104 = arith.constant 2 : index
    %c0_105 = arith.constant 0 : index
    %c0_106 = arith.constant 0 : index
    %206 = vector.load %arg18[%c2_104, %c0_105, %c0_106] : memref<3x16x1xf32, #tpu.memory_space<vmem>>, vector<1x16x1xf32>
    %207 = vector.shape_cast %206 : vector<1x16x1xf32> to vector<16x1xf32>
    %208 = vector.broadcast %207 : vector<16x1xf32> to vector<16x128xf32>
    %209 = arith.addf %205, %208 : vector<16x128xf32>
    %210 = arith.addf %156, %209 : vector<16x128xf32>
    %211 = vector.broadcast %1 : vector<1x128xf32> to vector<16x128xf32>
    %212 = arith.mulf %210, %211 : vector<16x128xf32>
    %213 = arith.truncf %212 : vector<16x128xf32> to vector<16x128xbf16>
    %c0_107 = arith.constant 0 : index
    %c0_108 = arith.constant 0 : index
    %214 = vector.load %arg19[%c0_107, %c0_108] : memref<4x16xbf16, #tpu.memory_space<vmem>>, vector<4x16xbf16>
    %cst_109 = arith.constant dense<0.000000e+00> : vector<4x128xf32>
    %215 = tpu.matmul %214, %213, %cst_109 {dimension_numbers = #tpu.dot_dimension_numbers<[1], [0], [0], [1], [0, 0, 1, 1], [], []>} : vector<4x16xbf16>, vector<16x128xbf16>, vector<4x128xf32> -> vector<4x128xf32>
    %c0_110 = arith.constant 0 : index
    %c0_111 = arith.constant 0 : index
    %216 = vector.load %arg20[%c0_110, %c0_111] : memref<4x1xf32, #tpu.memory_space<vmem>>, vector<4x1xf32>
    %217 = vector.broadcast %216 : vector<4x1xf32> to vector<4x128xf32>
    %218 = arith.addf %215, %217 : vector<4x128xf32>
    %219 = vector.broadcast %1 : vector<1x128xf32> to vector<4x128xf32>
    %220 = arith.mulf %218, %219 : vector<4x128xf32>
    %c0_112 = arith.constant 0 : index
    %c0_113 = arith.constant 0 : index
    %221 = vector.load %arg21[%c0_112, %c0_113] : memref<4x16xbf16, #tpu.memory_space<vmem>>, vector<4x16xbf16>
    %cst_114 = arith.constant dense<0.000000e+00> : vector<4x128xf32>
    %222 = tpu.matmul %221, %213, %cst_114 {dimension_numbers = #tpu.dot_dimension_numbers<[1], [0], [0], [1], [0, 0, 1, 1], [], []>} : vector<4x16xbf16>, vector<16x128xbf16>, vector<4x128xf32> -> vector<4x128xf32>
    %c0_115 = arith.constant 0 : index
    %c0_116 = arith.constant 0 : index
    %223 = vector.load %arg22[%c0_115, %c0_116] : memref<4x1xf32, #tpu.memory_space<vmem>>, vector<4x1xf32>
    %224 = vector.broadcast %223 : vector<4x1xf32> to vector<4x128xf32>
    %225 = arith.addf %222, %224 : vector<4x128xf32>
    %226 = vector.broadcast %1 : vector<1x128xf32> to vector<4x128xf32>
    %227 = arith.mulf %225, %226 : vector<4x128xf32>
    %c0_117 = arith.constant 0 : index
    %c0_118 = arith.constant 0 : index
    %c0_119 = arith.constant 0 : index
    %228 = vector.load %arg3[%c0_117, %c0_118, %c0_119] : memref<1x4x128xf32, #tpu.memory_space<vmem>>, vector<1x4x128xf32>
    %229 = vector.shape_cast %228 : vector<1x4x128xf32> to vector<4x128xf32>
    %230 = math.exp %227 : vector<4x128xf32>
    %231 = arith.mulf %229, %230 : vector<4x128xf32>
    %232 = arith.addf %220, %231 : vector<4x128xf32>
    %233 = vector.broadcast %1 : vector<1x128xf32> to vector<4x128xf32>
    %234 = arith.mulf %232, %233 : vector<4x128xf32>
    %c0_120 = arith.constant 0 : index
    %c0_121 = arith.constant 0 : index
    %c0_122 = arith.constant 0 : index
    %235 = vector.load %arg23[%c0_120, %c0_121, %c0_122] : memref<1x4x128xf32, #tpu.memory_space<vmem>>, vector<1x4x128xf32>
    %236 = vector.shape_cast %235 : vector<1x4x128xf32> to vector<4x128xf32>
    %237 = vector.shape_cast %234 : vector<4x128xf32> to vector<1x4x128xf32>
    tpu.vector_store %arg23[%c0_120, %c0_121, %c0_122], %237 {strides = array<i32>} : memref<1x4x128xf32, #tpu.memory_space<vmem>>, vector<1x4x128xf32>,
    %c0_123 = arith.constant 0 : index
    %c0_124 = arith.constant 0 : index
    %c0_125 = arith.constant 0 : index
    %238 = vector.load %arg24[%c0_123, %c0_124, %c0_125] : memref<1x4x128xf32, #tpu.memory_space<vmem>>, vector<1x4x128xf32>
    %239 = vector.shape_cast %238 : vector<1x4x128xf32> to vector<4x128xf32>
    %240 = vector.shape_cast %220 : vector<4x128xf32> to vector<1x4x128xf32>
    tpu.vector_store %arg24[%c0_123, %c0_124, %c0_125], %240 {strides = array<i32>} : memref<1x4x128xf32, #tpu.memory_space<vmem>>, vector<1x4x128xf32>,
    %c0_126 = arith.constant 0 : index
    %c0_127 = arith.constant 0 : index
    %c0_128 = arith.constant 0 : index
    %241 = vector.load %arg25[%c0_126, %c0_127, %c0_128] : memref<1x4x128xf32, #tpu.memory_space<vmem>>, vector<1x4x128xf32>
    %242 = vector.shape_cast %241 : vector<1x4x128xf32> to vector<4x128xf32>
    %243 = vector.shape_cast %227 : vector<4x128xf32> to vector<1x4x128xf32>
    tpu.vector_store %arg25[%c0_126, %c0_127, %c0_128], %243 {strides = array<i32>} : memref<1x4x128xf32, #tpu.memory_space<vmem>>, vector<1x4x128xf32>,
    return
  }
  func.func @transform_0(%arg0: i32) -> (i32, i32, i32) {
    %c0_i32 = arith.constant 0 : i32
    %c0_i32_0 = arith.constant 0 : i32
    %c0_i32_1 = arith.constant 0 : i32
    return %arg0, %c0_i32, %c0_i32_0 : i32, i32, i32
  }
  func.func @transform_1(%arg0: i32) -> (i32, i32, i32) {
    %c0_i32 = arith.constant 0 : i32
    %c0_i32_0 = arith.constant 0 : i32
    %c0_i32_1 = arith.constant 0 : i32
    return %arg0, %c0_i32, %c0_i32_0 : i32, i32, i32
  }
  func.func @transform_2(%arg0: i32) -> (i32, i32, i32) {
    %c0_i32 = arith.constant 0 : i32
    %c0_i32_0 = arith.constant 0 : i32
    %c0_i32_1 = arith.constant 0 : i32
    return %arg0, %c0_i32, %c0_i32_0 : i32, i32, i32
  }
  func.func @transform_3(%arg0: i32) -> (i32, i32, i32) {
    %c0_i32 = arith.constant 0 : i32
    %c0_i32_0 = arith.constant 0 : i32
    %c0_i32_1 = arith.constant 0 : i32
    return %arg0, %c0_i32, %c0_i32_0 : i32, i32, i32
  }
  func.func @transform_4(%arg0: i32) -> (i32, i32) {
    %c0_i32 = arith.constant 0 : i32
    %c0_i32_0 = arith.constant 0 : i32
    %c0_i32_1 = arith.constant 0 : i32
    return %c0_i32, %c0_i32_0 : i32, i32
  }
  func.func @transform_5(%arg0: i32) -> (i32, i32) {
    %c0_i32 = arith.constant 0 : i32
    %c0_i32_0 = arith.constant 0 : i32
    %c0_i32_1 = arith.constant 0 : i32
    return %c0_i32, %c0_i32_0 : i32, i32
  }
  func.func @transform_6(%arg0: i32) -> (i32, i32) {
    %c0_i32 = arith.constant 0 : i32
    %c0_i32_0 = arith.constant 0 : i32
    %c0_i32_1 = arith.constant 0 : i32
    return %c0_i32, %c0_i32_0 : i32, i32
  }
  func.func @transform_7(%arg0: i32) -> (i32, i32) {
    %c0_i32 = arith.constant 0 : i32
    %c0_i32_0 = arith.constant 0 : i32
    %c0_i32_1 = arith.constant 0 : i32
    return %c0_i32, %c0_i32_0 : i32, i32
  }
  func.func @transform_8(%arg0: i32) -> (i32, i32) {
    %c0_i32 = arith.constant 0 : i32
    %c0_i32_0 = arith.constant 0 : i32
    %c0_i32_1 = arith.constant 0 : i32
    return %c0_i32, %c0_i32_0 : i32, i32
  }
  func.func @transform_9(%arg0: i32) -> (i32, i32) {
    %c0_i32 = arith.constant 0 : i32
    %c0_i32_0 = arith.constant 0 : i32
    %c0_i32_1 = arith.constant 0 : i32
    return %c0_i32, %c0_i32_0 : i32, i32
  }
  func.func @transform_10(%arg0: i32) -> (i32, i32, i32) {
    %c0_i32 = arith.constant 0 : i32
    %c0_i32_0 = arith.constant 0 : i32
    %c0_i32_1 = arith.constant 0 : i32
    %c0_i32_2 = arith.constant 0 : i32
    return %c0_i32, %c0_i32_0, %c0_i32_1 : i32, i32, i32
  }
  func.func @transform_11(%arg0: i32) -> (i32, i32, i32) {
    %c0_i32 = arith.constant 0 : i32
    %c0_i32_0 = arith.constant 0 : i32
    %c0_i32_1 = arith.constant 0 : i32
    %c0_i32_2 = arith.constant 0 : i32
    return %c0_i32, %c0_i32_0, %c0_i32_1 : i32, i32, i32
  }
  func.func @transform_12(%arg0: i32) -> (i32, i32, i32) {
    %c0_i32 = arith.constant 0 : i32
    %c0_i32_0 = arith.constant 0 : i32
    %c0_i32_1 = arith.constant 0 : i32
    %c0_i32_2 = arith.constant 0 : i32
    return %c0_i32, %c0_i32_0, %c0_i32_1 : i32, i32, i32
  }
  func.func @transform_13(%arg0: i32) -> (i32, i32, i32) {
    %c0_i32 = arith.constant 0 : i32
    %c0_i32_0 = arith.constant 0 : i32
    %c0_i32_1 = arith.constant 0 : i32
    %c0_i32_2 = arith.constant 0 : i32
    return %c0_i32, %c0_i32_0, %c0_i32_1 : i32, i32, i32
  }
  func.func @transform_14(%arg0: i32) -> (i32, i32, i32) {
    %c0_i32 = arith.constant 0 : i32
    %c0_i32_0 = arith.constant 0 : i32
    %c0_i32_1 = arith.constant 0 : i32
    %c0_i32_2 = arith.constant 0 : i32
    return %c0_i32, %c0_i32_0, %c0_i32_1 : i32, i32, i32
  }
  func.func @transform_15(%arg0: i32) -> (i32, i32, i32) {
    %c0_i32 = arith.constant 0 : i32
    %c0_i32_0 = arith.constant 0 : i32
    %c0_i32_1 = arith.constant 0 : i32
    %c0_i32_2 = arith.constant 0 : i32
    return %c0_i32, %c0_i32_0, %c0_i32_1 : i32, i32, i32
  }
  func.func @transform_16(%arg0: i32) -> (i32, i32, i32) {
    %c0_i32 = arith.constant 0 : i32
    %c0_i32_0 = arith.constant 0 : i32
    %c0_i32_1 = arith.constant 0 : i32
    %c0_i32_2 = arith.constant 0 : i32
    return %c0_i32, %c0_i32_0, %c0_i32_1 : i32, i32, i32
  }
  func.func @transform_17(%arg0: i32) -> (i32, i32, i32) {
    %c0_i32 = arith.constant 0 : i32
    %c0_i32_0 = arith.constant 0 : i32
    %c0_i32_1 = arith.constant 0 : i32
    %c0_i32_2 = arith.constant 0 : i32
    return %c0_i32, %c0_i32_0, %c0_i32_1 : i32, i32, i32
  }
  func.func @transform_18(%arg0: i32) -> (i32, i32) {
    %c0_i32 = arith.constant 0 : i32
    %c0_i32_0 = arith.constant 0 : i32
    %c0_i32_1 = arith.constant 0 : i32
    return %c0_i32, %c0_i32_0 : i32, i32
  }
  func.func @transform_19(%arg0: i32) -> (i32, i32) {
    %c0_i32 = arith.constant 0 : i32
    %c0_i32_0 = arith.constant 0 : i32
    %c0_i32_1 = arith.constant 0 : i32
    return %c0_i32, %c0_i32_0 : i32, i32
  }
  func.func @transform_20(%arg0: i32) -> (i32, i32) {
    %c0_i32 = arith.constant 0 : i32
    %c0_i32_0 = arith.constant 0 : i32
    %c0_i32_1 = arith.constant 0 : i32
    return %c0_i32, %c0_i32_0 : i32, i32
  }
  func.func @transform_21(%arg0: i32) -> (i32, i32) {
    %c0_i32 = arith.constant 0 : i32
    %c0_i32_0 = arith.constant 0 : i32
    %c0_i32_1 = arith.constant 0 : i32
    return %c0_i32, %c0_i32_0 : i32, i32
  }
  func.func @transform_22(%arg0: i32) -> (i32, i32, i32) {
    %c0_i32 = arith.constant 0 : i32
    %c0_i32_0 = arith.constant 0 : i32
    %c0_i32_1 = arith.constant 0 : i32
    return %arg0, %c0_i32, %c0_i32_0 : i32, i32, i32
  }
  func.func @transform_23(%arg0: i32) -> (i32, i32, i32) {
    %c0_i32 = arith.constant 0 : i32
    %c0_i32_0 = arith.constant 0 : i32
    %c0_i32_1 = arith.constant 0 : i32
    return %arg0, %c0_i32, %c0_i32_0 : i32, i32, i32
  }
  func.func @transform_24(%arg0: i32) -> (i32, i32, i32) {
    %c0_i32 = arith.constant 0 : i32
    %c0_i32_0 = arith.constant 0 : i32
    %c0_i32_1 = arith.constant 0 : i32
    return %arg0, %c0_i32, %c0_i32_0 : i32, i32, i32
  }
}

</mosaic_0001>

<bundles_post_ra>
// kernel: tpu_custom_call.1
= control target key start
LH: loop header
LB: loop body
LE: loop exit
PB: predicated region body
PF: predicated region fallthrough
CT: control target
= control target key end

     0   :  { %s3328_s0 = inlined_call_operand.vmem [shape: bf16[2,8,128], index: 0, kind: input, shape index: {}]   ;;  %s3329_s1 = inlined_call_operand.vmem [shape: f32[2,1,8], index: 1, kind: input, shape index: {}]   ;;  %s3330_s2 = inlined_call_operand.vmem [shape: f32[2,4,128], index: 2, kind: input, shape index: {}]   ;;  %s3331_s3 = inlined_call_operand.vmem [shape: f32[2,1,128], index: 3, kind: input, shape index: {}]   ;;  %s3332_s4 = inlined_call_operand.vmem [shape: bf16[16,8], index: 4, kind: input, shape index: {}]   ;;  %s3333_s5 = inlined_call_operand.vmem [shape: f32[16,1], index: 5, kind: input, shape index: {}]   ;;  %s3334_s6 = inlined_call_operand.vmem [shape: f32[48,8], index: 6, kind: input, shape index: {}]   ;;  %s3335_s7 = inlined_call_operand.vmem [shape: f32[48,8], index: 7, kind: input, shape index: {}]   ;;  %s3336_s8 = inlined_call_operand.vmem [shape: f32[48,1], index: 8, kind: input, shape index: {}]   ;;  %s3337_s9 = inlined_call_operand.vmem [shape: f32[48,1], index: 9, kind: input, shape index: {}]   ;;  %s3338_s10 = inlined_call_operand.vmem [shape: bf16[3,16,48], index: 10, kind: input, shape index: {}]   ;;  %s3339_s11 = inlined_call_operand.vmem [shape: bf16[3,16,48], index: 11, kind: input, shape index: {}]   ;;  %s3340_s12 = inlined_call_operand.vmem [shape: f32[3,16,1], index: 12, kind: input, shape index: {}]   ;;  %s3341_s13 = inlined_call_operand.vmem [shape: f32[3,16,1], index: 13, kind: input, shape index: {}]   ;;  %s3342_s14 = inlined_call_operand.vmem [shape: bf16[3,16,16], index: 14, kind: input, shape index: {}]   ;;  %s3343_s15 = inlined_call_operand.vmem [shape: f32[3,16,1], index: 15, kind: input, shape index: {}]   ;;  %s3344_s16 = inlined_call_operand.vmem [shape: bf16[3,16,16], index: 16, kind: input, shape index: {}]   ;;  %s3345_s17 = inlined_call_operand.vmem [shape: f32[3,16,1], index: 17, kind: input, shape index: {}]   ;;  %s3346_s18 = inlined_call_operand.vmem [shape: bf16[4,16], index: 18, kind: input, shape index: {}]   ;;  %s3347_s19 = inlined_call_operand.vmem [shape: f32[4,1], index: 19, kind: input, shape index: {}]   ;;  %s3348_s20 = inlined_call_operand.vmem [shape: bf16[4,16], index: 20, kind: input, shape index: {}]   ;;  %s3349_s21 = inlined_call_operand.vmem [shape: f32[4,1], index: 21, kind: input, shape index: {}]   ;;  %s3350_s22 = inlined_call_operand.hbm [shape: f32[2,4,128], index: 22, kind: output, shape index: {0}]   ;;  %s3351_s23 = inlined_call_operand.hbm [shape: f32[2,4,128], index: 23, kind: output, shape index: {1}]   ;;  %s3352_s24 = inlined_call_operand.hbm [shape: f32[2,4,128], index: 24, kind: output, shape index: {2}]  }
   0x1   :  { %3374 = sst [smem:[#allocation16_spill]] %s3328_s0 }
   0x2   :  { %3375 = sst [smem:[#allocation17_spill]] %s3329_s1 }
   0x3   :  { %3376 = sst [smem:[#allocation18_spill]] %s3330_s2 }
   0x4   :  { %3377 = sst [smem:[#allocation19_spill]] %s3331_s3 }
   0x5   :  { %3378 = sst [smem:[#allocation20_spill]] %s3332_s4 }
   0x6   :  { %3379 = sst [smem:[#allocation21_spill]] %s3333_s5 }
   0x7   :  { %3380 = sst [smem:[#allocation22_spill]] %s3334_s6 }
   0x8   :  { %3381 = sst [smem:[#allocation23_spill]] %s3335_s7 }
   0x9   :  { %3382 = sst [smem:[#allocation24_spill]] %s3336_s8 }
   0xa   :  { %3383 = sst [smem:[#allocation25_spill]] %s3337_s9 }
   0xb   :  { %3384 = sst [smem:[#allocation26_spill]] %s3338_s10 }
   0xc   :  { %3385 = sst [smem:[#allocation27_spill]] %s3339_s11 }
   0xd   :  { %3386 = sst [smem:[#allocation28_spill]] %s3340_s12 }
   0xe   :  { %3387 = sst [smem:[#allocation29_spill]] %s3350_s22 }
   0xf   :  { %3388 = sst [smem:[#allocation30_spill]] %s3352_s24 }
  0x10   :  { %30 = vsyncpa [#allocation3], 0 }
  0x11   :  { %32 = vsyncpa [#allocation3 + $0x1], 0 }
  0x12   :  { %33 = vsyncpa [#allocation5], 0 }
  0x13   :  { %35 = vsyncpa [#allocation5 + $0x1], 0  ;;  %s2790_s5 = smov 0   ;;  %s2792_s26 = smov 0  }
  0x14   :  { %s2794_s27 = smov 0   ;;  %s2796_s28 = smov 0  }
  0x15 LB: > { %3389 = sst [smem:[#allocation9_spill]] %s2639_s5  ;;  %s2811_s6 = sadd.s32 4294967295, %s2651_s28   ;;  %s2651_s28 = sphi %s2796_s28, %s3421_s28   ;;  %s2647_s27 = sphi %s2794_s27, %s3423_s27   ;;  %s2643_s26 = sphi %s2792_s26, %s3425_s26   ;;  %s2639_s5 = sphi %s2790_s5, %s3424_s5  }
  0x16   : > { %3390 = sst [smem:[#allocation10_spill]] %s2647_s27  ;;  %s3357_s2 = sadd.s32 4294967294, %s2651_s28  }
  0x17   : > { %3391 = sst [smem:[#allocation11_spill]] %s2651_s28  ;;  %s2815_s29 = sadd.s32 1, %s2651_s28  }
  0x18   : > { %3392 = sst [smem:[#allocation12_spill]] %s2815_s29  ;;  %s530_s0 = sadd.s32 1, %s2647_s27 }
  0x19   : > { %s527_s7 = ssub.s32 %s2651_s28, %s2815_s29  ;;  %p540_p0 = scmp.ne.s32.totalorder %s2647_s27, %s2643_s26 }
  0x1a   : > { %p528_p1 = scmp.eq.s32.totalorder %s527_s7, 0  ;;  %p541_p2 = scmp.eq.s32.totalorder %s2811_s6, 1 }
  0x1b   : > { %p546_p3 = scmp.ne.s32.totalorder %s2643_s26, %s2639_s5  ;;  %p547_p4 = scmp.eq.s32.totalorder %s3357_s2, 1 }
  0x1c   : > { %s2828_s30 = scalar_select %p528_p1, %s2647_s27, %s530_s0  }
  0x1d   : > { %p2830_p5 = por %p541_p2, %p540_p0  ;;  %p2834_p6 = por %p547_p4, %p546_p3 }
  0x1e   : > { %3393 = sst [smem:[#allocation13_spill]] %s2828_s30  ;;  %p2194_p7 = scmp.ge.s32.totalorder %s2651_s28, 1 }
  0x1f   : > { %s3395_s25 = scalar_select %p2834_p6, 1, 0 }
  0x20   : > { %p697_p8 = scmp.lt.s32.totalorder %s2651_s28, 3 }
  0x21   : > { %3396 = sst [smem:[#allocation14_spill]] %s3395_s25 }
  0x22   : > { %p698_p9 = pnand %p2194_p7, %p697_p8 }
  0x24   : > { %701 = sbr.rel (%p698_p9) target bundleno = 2239 (0x8bf), region = 108 }
  0x29   : > { %p782_p10 = scmp.lt.s32.totalorder %s2811_s6, 1  ;;  %v2653_v0 = vmov 0.0   ;;  %vm2654_vm0 = vmmov 0   ;;  %s3397_s1 = sld [smem:[#allocation21_spill]]  ;;  %vm824_vm1 = vcmask 1043456   ;;  %v2655_v2 = vmov 0  }
  0x2a   : > { %2316 = vmatprep.subr.bf16.mxu0 %v2653_v0  ;;  %2318 = vmatprep.mubr.msk.bf16.mxu0 %vm2654_vm0, %v2653_v0  ;;  %s3398_s27 = sld [smem:[#allocation16_spill]]  ;;  %vm820_vm2 = vcmask 64512   ;;  %s2656_s5 = smov 1   ;;  %v1068_v31 = vld [vmem:[%s3341_s13 + $0x8] sm:$0xff]  ;;  %v1067_v32 = vld [vmem:[%s3341_s13] sm:$0xff]  ;;  %v798_v34 = vlaneseq  ;;  %vm1008_vm5 = vcmask 392192  }
  0x2b   : > { %s2848_s0 = scalar_select %p782_p10, %s2811_s6, 1  ;;  %2482 = vset.pattern.permute.xlu0 %v2655_v2  ;;  %2322 = vmatprep.subr.bf16.mxu1 %v2653_v0  ;;  %v1159_v57 = vld [vmem:[%s3343_s15] sm:$0xff]  ;;  %vm1176_vm6 = vcmask 130048  }
  0x2c   : > { %2328 = vmatprep.mubr.msk.bf16.mxu1 %vm2654_vm0, %v2653_v0  ;;  %2483 = vset.pattern.permute.xlu1 %v2655_v2  ;;  %s3399_s28 = sld [smem:[#allocation20_spill]]  ;;  %v2923_v35 = vand.u32 127, %v798_v34  ;;  %v1160_v2 = vld [vmem:[%s3343_s15 + $0x8] sm:$0xff]  ;;  %s1996_s25 = sand.u32 1, %s2811_s6  }
  0x2d   : > { %s3365_s7 = sshll.u32 %s2848_s0, 2  ;;  %s3400_s8 = sld [smem:[#allocation19_spill]] }
  0x2e   : > { %s3402_s4 = sld [smem:[#allocation17_spill]]  ;;  %vm983_vm3 = vcmp.lt.s32.totalorder %v2923_v35, 127  ;;  %vm972_vm4 = vcmp.ge.s32.totalorder %v2923_v35, 1  ;;  %vm1305_vm7 = vcmp.lt.s32.totalorder %v2923_v35, 126  ;;  %vm1294_vm8 = vcmp.ge.s32.totalorder %v2923_v35, 2  ;;  %s3214_s22 = sshll.u32 %s2811_s6, 6 }
  0x2f   : > { %v803_v1 = vld [vmem:[%s3397_s1] sm:$0xff]  ;;  %v804_v3 = vld [vmem:[%s3397_s1 + $0x8] sm:$0xff]  ;;  %s3406_s12 = sld [smem:[#allocation28_spill]]  ;;  %v2205_v37 = vsel %vm983_vm3, 1.0, %v2653_v0  ;;  %v2204_v43 = vsel %vm972_vm4, 1.0, %v2653_v0  ;;  %vm1633_vm9 = vcmp.lt.s32.totalorder %v2923_v35, 124  ;;  %s3226_s6 = scalar_lea.hbm %s3351_s23, %s3214_s22 }
  0x30   : > { %807 = vperm.xlu0 %2482, %v803_v1   ;;  %s785_s29 = scalar_lea.vmem %s3398_s27, %s3365_s7  ;;  %s3403_s7 = sld [smem:[#allocation23_spill]]  ;;  %vm1622_vm10 = vcmp.ge.s32.totalorder %v2923_v35, 4 }
  0x31   : > { %v802_v4 = vld [vmem:[%s785_s29] sm:$0xf]  ;;  %s3407_s10 = sld [smem:[#allocation26_spill]]  ;;  %s2659_s29 = smov 2  }
  0x32   : > { %v826_v5 = vsel %vm824_vm1, %v802_v4, 0  ;;  %v2484_v6 = vld [vmem:[%s3399_s28] sm:$0xff]   ;;  %s2657_s28 = smov 127   ;;  %s3408_s11 = sld [smem:[#allocation27_spill]] }
  0x33   : > { %2317 = vmatpush3.bf16.msra.mxu0 %v826_v5  ;;  %s2873_s27 = scalar_lea.vmem %s3400_s8, %s2848_s0  ;;  %s3409_s9 = sld [smem:[#allocation25_spill]] }
  0x34   : > { %812 = vperm.xlu0 %2482, %v804_v3   ;;  %2332 = vmatprep.subr.bf16.mxu0 %v2653_v0  ;;  %3401 = sst [smem:[#allocation15_spill]] %s2873_s27  ;;  %v2876_v8 = vld [vmem:[%s2873_s27] ss:$0 sm:$0xff]  ;;  %s788_s2 = scalar_lea.vmem %s3402_s4, %s2848_s0 }
  0x35   : > { %v2892_v18 = vld [vmem:[%s788_s2] ss:$0 sm:$0xff]  ;;  %s3404_s27 = sld [smem:[#allocation22_spill]]  ;;  %v992_v62 = vld [vmem:[%s3406_s12 + $0x8] sm:$0xff]  ;;  %s2660_s8 = smov 124  }
  0x36   : > { %2319 = vmatmul.mubr.msk.bf16.vlgmr.msra.gmra.mxu0 %vm820_vm2, %v2484_v6  ;;  %v926_v19 = vld [vmem:[%s3403_s7] sm:$0xff]  ;;  %v927_v27 = vld [vmem:[%s3403_s7 + $0x8] sm:$0xff]  ;;  %s3410_s4 = sld [smem:[#allocation24_spill]] }
  0x37   : > { %2338 = vmatprep.mubr.msk.bf16.mxu0 %vm2654_vm0, %v2653_v0  ;;  %v932_v20 = vmul.f32 %v2892_v18, %v926_v19  ;;  %v933_v29 = vmul.f32 %v2892_v18, %v927_v27  ;;  %v991_v33 = vld [vmem:[%s3406_s12] sm:$0xff] }
  0x38   : > { %v2485_v49 = vld [vmem:[%s3407_s10] sm:$0xff]  }
  0x39   : > { %v938_v22 = vsel %vm820_vm2, %v932_v20, 0.0  ;;  %v941_v30 = vsel %vm820_vm2, %v933_v29, 0.0  ;;  %v2486_v50 = vld [vmem:[%s3408_s11] sm:$0xff]   ;;  %v957_v58 = vld [vmem:[%s3409_s9 + $0x8] sm:$0xff] }
  0x3a   : > { %v956_v51 = vld [vmem:[%s3409_s9] sm:$0xff] }
  0x3b   : > { %s3405_s24 = smov %s3404_s27  ;;  %v878_v21 = vld [vmem:[%s3404_s27] sm:$0xff] }
  0x3c   : > { %v890_v23 = vmul.f32 %v2892_v18, %v878_v21  ;;  %v879_v24 = vld [vmem:[%s3405_s24 + $0x8] sm:$0xff]  ;;  %v914_v54 = vld [vmem:[%s3410_s4] sm:$0xff] }
  0x3d   : > { %v891_v26 = vmul.f32 %v2892_v18, %v879_v24  ;;  %v915_v61 = vld [vmem:[%s3410_s4 + $0x8] sm:$0xff] }
  0x3e   : > { %v896_v25 = vsel %vm820_vm2, %v890_v23, 0.0 }
  0x3f   : > { %v899_v28 = vsel %vm820_vm2, %v891_v26, 0.0 }
  0xab   : > { %v808_v7 = vpop.permute.xlu0 %807 }
  0xaf   : > { %v813_v13 = vpop.permute.xlu0 %812 }
  0xf6   : > { %v862_v9 = vpop.f32.mrf.mxu0 }
  0xf7   : > { %v863_v10 = vadd.f32 %v862_v9, %v808_v7 }
  0xf8   : > { %v2320_v11 = vpop.f32.mrf.mxu0 }
  0xf9   : > { %v2879_v12 = vmul.f32 %v2876_v8, %v863_v10 }
  0xfa   : > { %v865_v14 = vpop.f32.mrf.mxu0 }
  0xfb   : > { %v866_v15 = vadd.f32 %v865_v14, %v813_v13  ;;  %968 = vrot.lane.b32.xlu0 %v2879_v12, %s2656_s5  ;;  %979 = vrot.lane.b32.xlu1 %v2879_v12, %s2657_s28 }
  0xfc   : > { %v2321_v16 = vpop.f32.mrf.mxu0 }
  0xfd   : > { %v2884_v17 = vmul.f32 %v2876_v8, %v866_v15 }
  0xff   : > { %981 = vrot.lane.b32.xlu1 %v2884_v17, %s2657_s28  ;;  %v978_v46 = vpack.c.bf16 %v2884_v17, %v2879_v12  ;;  %s2658_s28 = smov 126  }
 0x103   : > { %970 = vrot.lane.b32.xlu1 %v2884_v17, %s2656_s5  ;;  %s2661_s5 = smov 4  }
 0x11a   : > { %939 = vadd.xlane.f32.xlu0 %v938_v22 }
 0x11e   : > { %897 = vadd.xlane.f32.xlu0 %v896_v25 }
 0x122   : > { %900 = vadd.xlane.f32.xlu0 %v899_v28 }
 0x127   : > { %942 = vadd.xlane.f32.xlu1 %v941_v30 }
 0x138   : > { %1076 = vperm.xlu0 %2482, %v1068_v31   ;;  %1071 = vperm.xlu1 %2483, %v1067_v32  }
 0x13c   : > { %995 = vperm.xlu0 %2482, %v991_v33  }
 0x16d   : > { %v980_v36 = vpop.permute.xlu1 %979  ;;  %v969_v44 = vpop.permute.xlu0 %968 }
 0x16e   : > { %v986_v39 = vmul.f32 %v2205_v37, %v980_v36  ;;  %v975_v47 = vmul.f32 %v2204_v43, %v969_v44 }
 0x171   : > { %v982_v38 = vpop.permute.xlu1 %981 }
 0x172   : > { %v987_v40 = vmul.f32 %v2205_v37, %v982_v38 }
 0x174   : > { %v988_v41 = vpack.c.bf16 %v987_v40, %v986_v39 }
 0x175   : > { %v971_v42 = vpop.permute.xlu1 %970 }
 0x176   : > { %2323 = vmatpush3.bf16.msra.mxu1 %v988_v41  ;;  %2333 = vmatpush3.bf16.msra.mxu0 %v988_v41  ;;  %v976_v45 = vmul.f32 %v2204_v43, %v971_v42 }
 0x177   : > { %2324 = vmatprep.subr.bf16.mxu1 %v2653_v0  ;;  %2334 = vmatprep.subr.bf16.mxu0 %v2653_v0 }
 0x178   : > { %v977_v48 = vpack.c.bf16 %v976_v45, %v975_v47  ;;  %v2487_v45 = vld [vmem:[%s3342_s14] sm:$0xff]  }
 0x17a   : > { %2325 = vmatpush3.bf16.msra.mxu1 %v978_v46  ;;  %2335 = vmatpush3.bf16.msra.mxu0 %v978_v46  ;;  %v2488_v46 = vld [vmem:[%s3344_s16] sm:$0xff]  }
 0x17b   : > { %2326 = vmatprep.subr.bf16.mxu1 %v2653_v0  ;;  %2336 = vmatprep.subr.bf16.mxu0 %v2653_v0 }
 0x17e   : > { %2327 = vmatpush3.bf16.msra.mxu1 %v977_v48  ;;  %2337 = vmatpush3.bf16.msra.mxu0 %v977_v48 }
 0x17f   : > { %2342 = vmatprep.subr.bf16.mxu1 %v2653_v0  ;;  %2348 = vmatprep.subr.bf16.mxu0 %v2653_v0 }
 0x181   : > { %2329 = vmatmul.mubr.msk.bf16.vlgmr.msra.gmra.mxu1 %vm1008_vm5, %v2485_v49  ;;  %2339 = vmatmul.mubr.msk.bf16.vlgmr.msra.gmra.mxu0 %vm1008_vm5, %v2486_v50 }
 0x182   : > { %2344 = vmatprep.mubr.msk.bf16.mxu1 %vm2654_vm0, %v2653_v0  ;;  %2350 = vmatprep.mubr.msk.bf16.mxu0 %vm2654_vm0, %v2653_v0 }
 0x1a3   : > { %v940_v52 = vpop.xlane.xlu0 %939 }
 0x1a4   : > { %v962_v53 = vadd.f32 %v956_v51, %v940_v52 }
 0x1a6   : > { %1130 = vperm.xlu1 %2483, %v962_v53  }
 0x1a7   : > { %v898_v55 = vpop.xlane.xlu0 %897 }
 0x1a8   : > { %v920_v56 = vadd.f32 %v914_v54, %v898_v55 }
 0x1aa   : > { %1055 = vperm.xlu0 %2482, %v920_v56  }
 0x1ab   : > { %v901_v63 = vpop.xlane.xlu0 %900 }
 0x1ac   : > { %v921_v1 = vadd.f32 %v915_v61, %v901_v63  ;;  %v929_v63 = vld [vmem:[%s3403_s7 + $0x18] sm:$0xff] }
 0x1ae   : > { %1163 = vperm.xlu0 %2482, %v1159_v57  }
 0x1b0   : > { %v943_v59 = vpop.xlane.xlu1 %942 }
 0x1b1   : > { %v963_v60 = vadd.f32 %v957_v58, %v943_v59 }
 0x1b3   : > { %1135 = vperm.xlu1 %2483, %v963_v60   ;;  %v1077_v11 = vpop.permute.xlu0 %1076 }
 0x1b4   : > { %v1072_v3 = vpop.permute.xlu1 %1071 }
 0x1b7   : > { %1000 = vperm.xlu1 %2483, %v992_v62   ;;  %v996_v25 = vpop.permute.xlu0 %995  ;;  %v881_v62 = vld [vmem:[%s3405_s24 + $0x18] sm:$0xff] }
 0x1bb   : > { %1060 = vperm.xlu1 %2483, %v921_v1  }
 0x1bf   : > { %1168 = vperm.xlu1 %2483, %v1160_v2   ;;  %v893_v2 = vmul.f32 %v2892_v18, %v881_v62 }
 0x221   : > { %v1131_v4 = vpop.permute.xlu1 %1130 }
 0x225   : > { %v1056_v29 = vpop.permute.xlu0 %1055 }
 0x229   : > { %v1164_v47 = vpop.permute.xlu0 %1163 }
 0x22e   : > { %v1136_v16 = vpop.permute.xlu1 %1135 }
 0x232   : > { %v1001_v26 = vpop.permute.xlu1 %1000 }
 0x236   : > { %v1061_v32 = vpop.permute.xlu1 %1060 }
 0x23a   : > { %v1169_v52 = vpop.permute.xlu1 %1168 }
 0x241   : > { %v1046_v5 = vpop.f32.mrf.mxu1  ;;  %v1121_v6 = vpop.f32.mrf.mxu0 }
 0x242   : > { %v1122_v7 = vadd.f32 %v1121_v6, %v1072_v3  ;;  %v1047_v27 = vadd.f32 %v1046_v5, %v996_v25  ;;  %v935_v3 = vmul.f32 %v2892_v18, %v929_v63  ;;  %v2226_v6 = vld [vmem:[%s3341_s13 + $0x10] sm:$0xff] }
 0x243   : > { %v2330_v9 = vpop.f32.mrf.mxu1  ;;  %v2340_v10 = vpop.f32.mrf.mxu0 }
 0x244   : > { %v1138_v13 = vadd.f32 %v1131_v4, %v1122_v7  ;;  %v1063_v31 = vadd.f32 %v1056_v29, %v1047_v27  ;;  %v905_v4 = vsel %vm820_vm2, %v893_v2, 0.0  ;;  %v947_v5 = vsel %vm820_vm2, %v935_v3, 0.0  ;;  %v2227_v7 = vld [vmem:[%s3341_s13 + $0x18] sm:$0xff]  ;;  %v2220_v9 = vld [vmem:[%s3406_s12 + $0x10] sm:$0xff]  ;;  %v2490_v27 = vld [vmem:[%s3408_s11 + $0x8] sm:$0xff]  }
 0x245   : > { %v1049_v14 = vpop.f32.mrf.mxu1  ;;  %v1124_v15 = vpop.f32.mrf.mxu0  ;;  %v2217_v10 = vsel %vm1305_vm7, 1.0, %v2653_v0 }
 0x246   : > { %v2210_v19 = vmul.f32 -1.442695, %v1138_v13  ;;  %v1125_v20 = vadd.f32 %v1124_v15, %v1077_v11  ;;  %v1050_v28 = vadd.f32 %v1049_v14, %v1001_v26  ;;  %v2489_v26 = vld [vmem:[%s3407_s10 + $0x8] sm:$0xff]  }
 0x247   : > { %v2341_v21 = vpop.f32.mrf.mxu0  ;;  %v2331_v22 = vpop.f32.mrf.mxu1 }
 0x248   : > { %2496 = vpow2.f32 %v2210_v19  ;;  %v1139_v23 = vadd.f32 %v1136_v16, %v1125_v20  ;;  %v1064_v34 = vadd.f32 %v1061_v32, %v1050_v28  ;;  %v2216_v20 = vsel %vm1294_vm8, 1.0, %v2653_v0  ;;  %v958_v28 = vld [vmem:[%s3409_s9 + $0x10] sm:$0xff] }
 0x24a   : > { %v2211_v24 = vmul.f32 -1.442695, %v1139_v23 }
 0x24c   : > { %2498 = vpow2.f32 %v2211_v24 }
 0x24d   : > { %2500 = vtanh.f32 %v1063_v31  ;;  %v916_v31 = vld [vmem:[%s3410_s4 + $0x10] sm:$0xff] }
 0x255   : > { %v2497_v30 = vpop.eup %2496 }
 0x256   : > { %v1148_v33 = vadd.f32 1.0, %v2497_v30 }
 0x258   : > { %2502 = vrcp.f32 %v1148_v33 }
 0x259   : > { %v2499_v36 = vpop.eup %2498  ;;  %2504 = vtanh.f32 %v1064_v34  ;;  %v959_v34 = vld [vmem:[%s3409_s9 + $0x18] sm:$0xff] }
 0x25a   : > { %v1149_v37 = vadd.f32 1.0, %v2499_v36  ;;  %v2501_v38 = vpop.eup %2500  ;;  %v2234_v36 = vld [vmem:[%s3343_s15 + $0x10] sm:$0xff] }
 0x25c   : > { %2506 = vrcp.f32 %v1149_v37 }
 0x265   : > { %v2503_v39 = vpop.eup %2502 }
 0x266   : > { %v2505_v40 = vpop.eup %2504  ;;  %v1154_v42 = vmul.f32 %v2503_v39, %v2501_v38 }
 0x269   : > { %v2507_v41 = vpop.eup %2506 }
 0x26a   : > { %v1155_v43 = vmul.f32 %v2507_v41, %v2505_v40  ;;  %v917_v41 = vld [vmem:[%s3410_s4 + $0x18] sm:$0xff] }
 0x26c   : > { %v1156_v44 = vpack.c.bf16 %v1155_v43, %v1154_v42  ;;  %v2221_v42 = vld [vmem:[%s3406_s12 + $0x18] sm:$0xff] }
 0x26e   : > { %2343 = vmatpush3.bf16.msra.mxu1 %v1156_v44  ;;  %2349 = vmatpush3.bf16.msra.mxu0 %v1156_v44 }
 0x26f   : > { %2354 = vmatprep.subr.bf16.mxu1 %v2653_v0  ;;  %2364 = vmatprep.subr.bf16.mxu0 %v2653_v0 }
 0x271   : > { %2345 = vmatmul.mubr.msk.bf16.vlgmr.msra.gmra.mxu1 %vm1176_vm6, %v2487_v45  ;;  %2351 = vmatmul.mubr.msk.bf16.vlgmr.msra.gmra.mxu0 %vm1176_vm6, %v2488_v46 }
 0x272   : > { %2360 = vmatprep.mubr.msk.bf16.mxu1 %vm2654_vm0, %v2653_v0  ;;  %2370 = vmatprep.mubr.msk.bf16.mxu0 %vm2654_vm0, %v2653_v0 }
 0x331   : > { %v1214_v48 = vpop.f32.mrf.mxu1  ;;  %v3061_v38 = vpop.f32.mrf.mxu0 }
 0x332   : > { %v1215_v49 = vadd.f32 %v1214_v48, %v1164_v47  ;;  %v2235_v47 = vld [vmem:[%s3343_s15 + $0x18] sm:$0xff] }
 0x333   : > { %v2346_v50 = vpop.f32.mrf.mxu1  ;;  %v2352_v40 = vpop.f32.mrf.mxu0 }
 0x334   : > { %v1221_v51 = vadd.f32 %v1215_v49, %v2879_v12  ;;  %v928_v12 = vld [vmem:[%s3403_s7 + $0x10] sm:$0xff] }
 0x335   : > { %v1217_v53 = vpop.f32.mrf.mxu1  ;;  %v934_v59 = vmul.f32 %v2892_v18, %v928_v12  ;;  %v3069_v43 = vpop.f32.mrf.mxu0 }
 0x336   : > { %v2986_v54 = vmul.f32 %v2876_v8, %v1221_v51  ;;  %v1218_v55 = vadd.f32 %v1217_v53, %v1169_v52 }
 0x337   : > { %v2347_v56 = vpop.f32.mrf.mxu1  ;;  %v944_v60 = vsel %vm820_vm2, %v934_v59, 0.0  ;;  %v2353_v45 = vpop.f32.mrf.mxu0 }
 0x338   : > { %v1222_v57 = vadd.f32 %v1218_v55, %v2884_v17  ;;  %1301 = vrot.lane.b32.xlu0 %v2986_v54, %s2658_s28  ;;  %v880_v17 = vld [vmem:[%s3405_s24 + $0x10] sm:$0xff]  ;;  %v882_v45 = vld [vmem:[%s3405_s24 + $0x20] sm:$0xff] }
 0x339   : > { %v892_v61 = vmul.f32 %v2892_v18, %v880_v17 }
 0x33a   : > { %v2991_v58 = vmul.f32 %v2876_v8, %v1222_v57 }
 0x33b   : > { %v902_v1 = vsel %vm820_vm2, %v892_v61, 0.0 }
 0x33c   : > { %1290 = vrot.lane.b32.xlu0 %v2986_v54, %s2659_s29  ;;  %1303 = vrot.lane.b32.xlu1 %v2991_v58, %s2658_s28  ;;  %v1300_v23 = vpack.c.bf16 %v2991_v58, %v2986_v54  ;;  %s3370_s28 = sand.u32 1, %s2643_s26  }
 0x340   : > { %1292 = vrot.lane.b32.xlu1 %v2991_v58, %s2659_s29  ;;  %s3210_s29 = sshll.u32 %s3370_s28, 2 }
 0x341   : > { %s774_s1 = scalar_lea.vmem [#allocation4], %s3210_s29  ;;  %s781_s2 = scalar_lea.vmem [#allocation6], %s3210_s29 }
 0x342   : > { %s2028_s27 = sshll.u32 %s774_s1, 4  ;;  %s2041_s30 = sshll.u32 %s781_s2, 4  ;;  %s3228_s27 = int_to_ptr.vmem [resolvable:$true] %s2028_s27  ;;  %s3236_s30 = int_to_ptr.vmem [resolvable:$true] %s2041_s30 }
 0x35b   : > { %945 = vadd.xlane.f32.xlu0 %v944_v60 }
 0x35f   : > { %903 = vadd.xlane.f32.xlu0 %v902_v1 }
 0x363   : > { %906 = vadd.xlane.f32.xlu0 %v905_v4 }
 0x364   : > { %948 = vadd.xlane.f32.xlu1 %v947_v5 }
 0x375   : > { %1396 = vperm.xlu1 %2483, %v2226_v6  }
 0x379   : > { %1401 = vperm.xlu0 %2482, %v2227_v7  }
 0x37d   : > { %1319 = vperm.xlu0 %2482, %v2220_v9  }
 0x3aa   : > { %v1302_v11 = vpop.permute.xlu0 %1301 }
 0x3ab   : > { %v1308_v14 = vmul.f32 %v2217_v10, %v1302_v11 }
 0x3ae   : > { %v1304_v13 = vpop.permute.xlu1 %1303  ;;  %v1291_v21 = vpop.permute.xlu0 %1290 }
 0x3af   : > { %v1309_v15 = vmul.f32 %v2217_v10, %v1304_v13  ;;  %v1297_v24 = vmul.f32 %v2216_v20, %v1291_v21 }
 0x3b1   : > { %v1310_v16 = vpack.c.bf16 %v1309_v15, %v1308_v14 }
 0x3b2   : > { %v1293_v19 = vpop.permute.xlu1 %1292 }
 0x3b3   : > { %2355 = vmatpush3.bf16.msra.mxu1 %v1310_v16  ;;  %2365 = vmatpush3.bf16.msra.mxu0 %v1310_v16  ;;  %v1298_v22 = vmul.f32 %v2216_v20, %v1293_v19 }
 0x3b4   : > { %2356 = vmatprep.subr.bf16.mxu1 %v2653_v0  ;;  %2366 = vmatprep.subr.bf16.mxu0 %v2653_v0 }
 0x3b5   : > { %v1299_v25 = vpack.c.bf16 %v1298_v22, %v1297_v24 }
 0x3b7   : > { %2357 = vmatpush3.bf16.msra.mxu1 %v1300_v23  ;;  %2367 = vmatpush3.bf16.msra.mxu0 %v1300_v23 }
 0x3b8   : > { %2358 = vmatprep.subr.bf16.mxu1 %v2653_v0  ;;  %2368 = vmatprep.subr.bf16.mxu0 %v2653_v0 }
 0x3bb   : > { %2359 = vmatpush3.bf16.msra.mxu1 %v1299_v25  ;;  %2369 = vmatpush3.bf16.msra.mxu0 %v1299_v25 }
 0x3bc   : > { %2374 = vmatprep.subr.bf16.mxu1 %v2653_v0  ;;  %2380 = vmatprep.subr.bf16.mxu0 %v2653_v0 }
 0x3be   : > { %2361 = vmatmul.mubr.msk.bf16.vlgmr.msra.gmra.mxu1 %vm1008_vm5, %v2489_v26  ;;  %2371 = vmatmul.mubr.msk.bf16.vlgmr.msra.gmra.mxu0 %vm1008_vm5, %v2490_v27  ;;  %v2491_v26 = vld [vmem:[%s3342_s14 + $0x8] sm:$0xff]  }
 0x3bf   : > { %2376 = vmatprep.mubr.msk.bf16.mxu1 %vm2654_vm0, %v2653_v0  ;;  %2382 = vmatprep.mubr.msk.bf16.mxu0 %vm2654_vm0, %v2653_v0  ;;  %v2492_v27 = vld [vmem:[%s3344_s16 + $0x8] sm:$0xff]  }
 0x3e4   : > { %v946_v29 = vpop.xlane.xlu0 %945 }
 0x3e5   : > { %v964_v30 = vadd.f32 %v958_v28, %v946_v29 }
 0x3e7   : > { %1455 = vperm.xlu1 %2483, %v964_v30  }
 0x3e8   : > { %v904_v32 = vpop.xlane.xlu0 %903 }
 0x3e9   : > { %v922_v33 = vadd.f32 %v916_v31, %v904_v32 }
 0x3eb   : > { %1378 = vperm.xlu0 %2482, %v922_v33  }
 0x3ec   : > { %v907_v44 = vpop.xlane.xlu0 %906 }
 0x3ed   : > { %v949_v37 = vpop.xlane.xlu1 %948  ;;  %v923_v46 = vadd.f32 %v917_v41, %v907_v44 }
 0x3ee   : > { %v965_v39 = vadd.f32 %v959_v34, %v949_v37 }
 0x3ef   : > { %1490 = vperm.xlu0 %2482, %v2234_v36  }
 0x3f0   : > { %1460 = vperm.xlu1 %2483, %v965_v39  }
 0x3f1   : > { %v1397_v48 = vpop.permute.xlu1 %1396 }
 0x3f4   : > { %1324 = vperm.xlu1 %2483, %v2221_v42   ;;  %v1402_v56 = vpop.permute.xlu0 %1401 }
 0x3f8   : > { %1383 = vperm.xlu1 %2483, %v923_v46   ;;  %v1320_v3 = vpop.permute.xlu0 %1319  ;;  %v894_v46 = vmul.f32 %v2892_v18, %v882_v45 }
 0x3fc   : > { %1495 = vperm.xlu1 %2483, %v2235_v47   ;;  %v883_v47 = vld [vmem:[%s3405_s24 + $0x28] sm:$0xff] }
 0x462   : > { %v1456_v51 = vpop.permute.xlu1 %1455 }
 0x466   : > { %v1379_v7 = vpop.permute.xlu0 %1378 }
 0x46a   : > { %v1491_v28 = vpop.permute.xlu0 %1490 }
 0x46b   : > { %v1461_v17 = vpop.permute.xlu1 %1460 }
 0x46f   : > { %v1325_v4 = vpop.permute.xlu1 %1324 }
 0x473   : > { %v1384_v11 = vpop.permute.xlu1 %1383 }
 0x477   : > { %v1496_v33 = vpop.permute.xlu1 %1495 }
 0x47e   : > { %v1369_v49 = vpop.f32.mrf.mxu1  ;;  %v1446_v50 = vpop.f32.mrf.mxu0 }
 0x47f   : > { %v1447_v52 = vadd.f32 %v1446_v50, %v1397_v48  ;;  %v1370_v5 = vadd.f32 %v1369_v49, %v1320_v3  ;;  %v931_v48 = vld [vmem:[%s3403_s7 + $0x28] sm:$0xff]  ;;  %v908_v49 = vsel %vm820_vm2, %v894_v46, 0.0  ;;  %v895_v50 = vmul.f32 %v2892_v18, %v883_v47 }
 0x480   : > { %v2362_v53 = vpop.f32.mrf.mxu1  ;;  %v2372_v55 = vpop.f32.mrf.mxu0 }
 0x481   : > { %v1463_v57 = vadd.f32 %v1456_v51, %v1447_v52  ;;  %v1386_v10 = vadd.f32 %v1379_v7, %v1370_v5  ;;  %v937_v51 = vmul.f32 %v2892_v18, %v931_v48  ;;  %v911_v52 = vsel %vm820_vm2, %v895_v50, 0.0  ;;  %v2254_v55 = vld [vmem:[%s3341_s13 + $0x20] sm:$0xff]  ;;  %v2494_v5 = vld [vmem:[%s3408_s11 + $0x10] sm:$0xff]  }
 0x482   : > { %v1372_v12 = vpop.f32.mrf.mxu1  ;;  %v1449_v59 = vpop.f32.mrf.mxu0 }
 0x483   : > { %v2230_v60 = vmul.f32 -1.442695, %v1463_v57  ;;  %v1450_v61 = vadd.f32 %v1449_v59, %v1402_v56  ;;  %v1373_v6 = vadd.f32 %v1372_v12, %v1325_v4  ;;  %v953_v53 = vsel %vm820_vm2, %v937_v51, 0.0  ;;  %v2255_v56 = vld [vmem:[%s3341_s13 + $0x28] sm:$0xff]  ;;  %v2493_v4 = vld [vmem:[%s3407_s10 + $0x10] sm:$0xff]   ;;  %s2662_s10 = smov [#allocation4]  }
 0x484   : > { %v2373_v62 = vpop.f32.mrf.mxu0  ;;  %v2363_v63 = vpop.f32.mrf.mxu1  ;;  %v2245_v57 = vsel %vm1633_vm9, 1.0, %v2653_v0 }
 0x485   : > { %2508 = vpow2.f32 %v2230_v60  ;;  %v1464_v1 = vadd.f32 %v1461_v17, %v1450_v61  ;;  %v1387_v14 = vadd.f32 %v1384_v11, %v1373_v6  ;;  %v2244_v63 = vsel %vm1622_vm10, 1.0, %v2653_v0  ;;  %v960_v6 = vld [vmem:[%s3409_s9 + $0x20] sm:$0xff] }
 0x487   : > { %v2231_v2 = vmul.f32 -1.442695, %v1464_v1 }
 0x489   : > { %2510 = vpow2.f32 %v2231_v2 }
 0x48a   : > { %2512 = vtanh.f32 %v1386_v10  ;;  %v918_v10 = vld [vmem:[%s3410_s4 + $0x20] sm:$0xff] }
 0x492   : > { %v2509_v9 = vpop.eup %2508 }
 0x493   : > { %v1473_v13 = vadd.f32 1.0, %v2509_v9 }
 0x495   : > { %2514 = vrcp.f32 %v1473_v13 }
 0x496   : > { %v2511_v15 = vpop.eup %2510  ;;  %2516 = vtanh.f32 %v1387_v14  ;;  %v961_v14 = vld [vmem:[%s3409_s9 + $0x28] sm:$0xff] }
 0x497   : > { %v1474_v16 = vadd.f32 1.0, %v2511_v15  ;;  %v2513_v19 = vpop.eup %2512  ;;  %v1227_v15 = vld [vmem:[%s3345_s17] sm:$0xff] }
 0x499   : > { %2518 = vrcp.f32 %v1474_v16 }
 0x4a2   : > { %v2515_v20 = vpop.eup %2514 }
 0x4a3   : > { %v2517_v21 = vpop.eup %2516  ;;  %v1479_v23 = vmul.f32 %v2515_v20, %v2513_v19 }
 0x4a6   : > { %v2519_v22 = vpop.eup %2518 }
 0x4a7   : > { %v1480_v24 = vmul.f32 %v2519_v22, %v2517_v21  ;;  %v2240_v22 = vld [vmem:[%s3345_s17 + $0x10] sm:$0xff] }
 0x4a9   : > { %v1481_v25 = vpack.c.bf16 %v1480_v24, %v1479_v23  ;;  %v919_v23 = vld [vmem:[%s3410_s4 + $0x28] sm:$0xff]  ;;  %s2539_s4 = sshll.u32 %s2662_s10, 4  ;;  %s2540_s4 = int_to_ptr.vmem [resolvable:$false] %s2539_s4 }
 0x4aa   : > { %v2249_v24 = vld [vmem:[%s3406_s12 + $0x28] sm:$0xff]  ;;  %s2541_s28 = scalar_lea.vmem %s2540_s4, 128  ;;  %p2542_p0 = scmp.lt.s32.totalorder %s3228_s27, %s2540_s4 }
 0x4ab   : > { %2375 = vmatpush3.bf16.msra.mxu1 %v1481_v25  ;;  %2381 = vmatpush3.bf16.msra.mxu0 %v1481_v25 }
 0x4ac   : > { %2386 = vmatprep.subr.bf16.mxu1 %v2653_v0  ;;  %2396 = vmatprep.subr.bf16.mxu0 %v2653_v0 }
 0x4ae   : > { %2377 = vmatmul.mubr.msk.bf16.vlgmr.msra.gmra.mxu1 %vm1176_vm6, %v2491_v26  ;;  %2383 = vmatmul.mubr.msk.bf16.vlgmr.msra.gmra.mxu0 %vm1176_vm6, %v2492_v27 }
 0x4af   : > { %2392 = vmatprep.mubr.msk.bf16.mxu1 %vm2654_vm0, %v2653_v0  ;;  %2402 = vmatprep.mubr.msk.bf16.mxu0 %vm2654_vm0, %v2653_v0 }
 0x56e   : > { %v1540_v29 = vpop.f32.mrf.mxu1  ;;  %v3155_v19 = vpop.f32.mrf.mxu0 }
 0x56f   : > { %v1541_v30 = vadd.f32 %v1540_v29, %v1491_v28  ;;  %v2262_v29 = vld [vmem:[%s3345_s17 + $0x20] sm:$0xff] }
 0x570   : > { %v2378_v31 = vpop.f32.mrf.mxu1  ;;  %v2384_v21 = vpop.f32.mrf.mxu0 }
 0x571   : > { %v1547_v32 = vadd.f32 %v1541_v30, %v2986_v54  ;;  %v930_v54 = vld [vmem:[%s3403_s7 + $0x20] sm:$0xff]  ;;  %v1228_v31 = vld [vmem:[%s3345_s17 + $0x8] sm:$0xff]  ;;  %s3411_s7 = sld [smem:[#allocation30_spill]] }
 0x572   : > { %v1543_v34 = vpop.f32.mrf.mxu1  ;;  %v936_v44 = vmul.f32 %v2892_v18, %v930_v54  ;;  %v2248_v18 = vld [vmem:[%s3406_s12 + $0x20] sm:$0xff]  ;;  %v3166_v25 = vpop.f32.mrf.mxu0 }
 0x573   : > { %v1544_v36 = vadd.f32 %v1543_v34, %v1496_v33  ;;  %v1549_v37 = vmul.f32 %v2876_v8, %v1547_v32  ;;  %v1932_v30 = vld [vmem:[%s3349_s21] sm:$0xf]  ;;  %v2241_v32 = vld [vmem:[%s3345_s17 + $0x18] sm:$0xff]  ;;  %v2263_v33 = vld [vmem:[%s3345_s17 + $0x28] sm:$0xff] }
 0x574   : > { %v2379_v39 = vpop.f32.mrf.mxu1  ;;  %v2385_v27 = vpop.f32.mrf.mxu0  ;;  %v1881_v34 = vld [vmem:[%s3347_s19] sm:$0xf] }
 0x575   : > { %v1548_v40 = vadd.f32 %v1544_v36, %v2991_v58  ;;  %1629 = vrot.lane.b32.xlu0 %v1549_v37, %s2660_s8  ;;  %v950_v58 = vsel %vm820_vm2, %v936_v44, 0.0 }
 0x577   : > { %v1550_v41 = vmul.f32 %v2876_v8, %v1548_v40  ;;  %s3234_s9 = scalar_lea.hbm %s3411_s7, %s3214_s22 }
 0x579   : > { %1618 = vrot.lane.b32.xlu0 %v1549_v37, %s2661_s5  ;;  %1631 = vrot.lane.b32.xlu1 %v1550_v41, %s2660_s8  ;;  %v1628_v42 = vpack.c.bf16 %v1550_v41, %v1549_v37  ;;  %s3239_s8 = scalar_lea.sflag [#allocation5], %s1996_s25 }
 0x57d   : > { %1620 = vrot.lane.b32.xlu1 %v1550_v41, %s2661_s5  ;;  %s2535_s5 = scalar_lea.vmem %s3228_s27, 64 }
 0x57e   : > { %p2536_p11 = scmp.ne.s32.totalorder %s3228_s27, %s2535_s5  ;;  %p2543_p1 = scmp.lt.s32.totalorder %s2541_s28, %s2535_s5 }
 0x580   : > { %p2537_p12 = pnand %p2536_p11, %p2830_p5  ;;  %p2544_p2 = por %p2543_p1, %p2542_p0 }
 0x582   : > { %p2538_p13 = pneg %p2537_p12 }
 0x584   : > { %p2545_p3 = pnand %p2544_p2, %p2538_p13 }
 0x598   : > { %951 = vadd.xlane.f32.xlu0 %v950_v58 }
 0x59c   : > { %909 = vadd.xlane.f32.xlu0 %v908_v49 }
 0x5a0   : > { %912 = vadd.xlane.f32.xlu0 %v911_v52 }
 0x5a1   : > { %954 = vadd.xlane.f32.xlu1 %v953_v53 }
 0x5b2   : > { %1724 = vperm.xlu1 %2483, %v2254_v55  }
 0x5b6   : > { %1729 = vperm.xlu0 %2482, %v2255_v56  }
 0x5ba   : > { %1647 = vperm.xlu0 %2482, %v2248_v18  }
 0x5e7   : > { %v1630_v12 = vpop.permute.xlu0 %1629 }
 0x5e8   : > { %v1636_v17 = vmul.f32 %v2245_v57, %v1630_v12 }
 0x5eb   : > { %v1632_v59 = vpop.permute.xlu1 %1631  ;;  %v1619_v1 = vpop.permute.xlu0 %1618 }
 0x5ec   : > { %v1637_v60 = vmul.f32 %v2245_v57, %v1632_v59  ;;  %v1625_v3 = vmul.f32 %v2244_v63, %v1619_v1 }
 0x5ee   : > { %v1638_v61 = vpack.c.bf16 %v1637_v60, %v1636_v17 }
 0x5ef   : > { %v1621_v62 = vpop.permute.xlu1 %1620 }
 0x5f0   : > { %2387 = vmatpush3.bf16.msra.mxu1 %v1638_v61  ;;  %2397 = vmatpush3.bf16.msra.mxu0 %v1638_v61  ;;  %v1626_v2 = vmul.f32 %v2244_v63, %v1621_v62 }
 0x5f1   : > { %2388 = vmatprep.subr.bf16.mxu1 %v2653_v0  ;;  %2398 = vmatprep.subr.bf16.mxu0 %v2653_v0 }
 0x5f2   : > { %v1627_v35 = vpack.c.bf16 %v1626_v2, %v1625_v3 }
 0x5f4   : > { %2389 = vmatpush3.bf16.msra.mxu1 %v1628_v42  ;;  %2399 = vmatpush3.bf16.msra.mxu0 %v1628_v42 }
 0x5f5   : > { %2390 = vmatprep.subr.bf16.mxu1 %v2653_v0  ;;  %2400 = vmatprep.subr.bf16.mxu0 %v2653_v0 }
 0x5f8   : > { %2391 = vmatpush3.bf16.msra.mxu1 %v1627_v35  ;;  %2401 = vmatpush3.bf16.msra.mxu0 %v1627_v35 }
 0x5f9   : > { %2406 = vmatprep.subr.bf16.mxu1 %v2653_v0  ;;  %2412 = vmatprep.subr.bf16.mxu0 %v2653_v0 }
 0x5fb   : > { %2393 = vmatmul.mubr.msk.bf16.vlgmr.msra.gmra.mxu1 %vm1008_vm5, %v2493_v4  ;;  %2403 = vmatmul.mubr.msk.bf16.vlgmr.msra.gmra.mxu0 %vm1008_vm5, %v2494_v5 }
 0x5fc   : > { %2408 = vmatprep.mubr.msk.bf16.mxu1 %vm2654_vm0, %v2653_v0  ;;  %2414 = vmatprep.mubr.msk.bf16.mxu0 %vm2654_vm0, %v2653_v0 }
 0x621   : > { %v952_v7 = vpop.xlane.xlu0 %951 }
 0x622   : > { %v966_v9 = vadd.f32 %v960_v6, %v952_v7 }
 0x624   : > { %1783 = vperm.xlu1 %2483, %v966_v9   ;;  %v2495_v9 = vld [vmem:[%s3344_s16 + $0x10] sm:$0xff]  }
 0x625   : > { %v910_v11 = vpop.xlane.xlu0 %909 }
 0x626   : > { %v924_v13 = vadd.f32 %v918_v10, %v910_v11 }
 0x628   : > { %1706 = vperm.xlu0 %2482, %v924_v13  }
 0x629   : > { %v913_v26 = vpop.xlane.xlu0 %912 }
 0x62a   : > { %v955_v16 = vpop.xlane.xlu1 %954  ;;  %v925_v28 = vadd.f32 %v919_v23, %v913_v26 }
 0x62b   : > { %v967_v20 = vadd.f32 %v961_v14, %v955_v16 }
 0x62c   : > { %1231 = vperm.xlu0 %2482, %v1227_v15  }
 0x62d   : > { %1788 = vperm.xlu1 %2483, %v967_v20  }
 0x62e   : > { %v1725_v36 = vpop.permute.xlu1 %1724 }
 0x630   : > { %1559 = vperm.xlu0 %2482, %v2240_v22  }
 0x631   : > { %1652 = vperm.xlu1 %2483, %v2249_v24   ;;  %v1730_v44 = vpop.permute.xlu0 %1729 }
 0x634   : > { %1818 = vperm.xlu0 %2482, %v2262_v29  }
 0x635   : > { %1711 = vperm.xlu1 %2483, %v925_v28   ;;  %v1648_v55 = vpop.permute.xlu0 %1647 }
 0x638   : > { %1935 = vperm.xlu0 %2482, %v1932_v30  }
 0x639   : > { %1236 = vperm.xlu1 %2483, %v1228_v31  }
 0x63d   : > { %1564 = vperm.xlu1 %2483, %v2241_v32  }
 0x641   : > { %1823 = vperm.xlu1 %2483, %v2263_v33  }
 0x645   : > { %1884 = vperm.xlu1 %2483, %v1881_v34   ;;  %v1931_v34 = vld [vmem:[%s3348_s20] sm:$0x3] }
 0x69f   : > { %v1784_v40 = vpop.permute.xlu1 %1783 }
 0x6a3   : > { %v1707_v12 = vpop.permute.xlu0 %1706 }
 0x6a7   : > { %v1232_v10 = vpop.permute.xlu0 %1231 }
 0x6a8   : > { %v1789_v47 = vpop.permute.xlu1 %1788  ;;  %v1282_v21 = vadd.f32 %v3061_v38, %v1232_v10 }
 0x6ab   : > { %v1560_v13 = vpop.permute.xlu0 %1559 }
 0x6ac   : > { %v1653_v56 = vpop.permute.xlu1 %1652  ;;  %v1610_v15 = vadd.f32 %v3155_v19, %v1560_v13 }
 0x6ae   : > { %v1616_v26 = vadd.f32 %v1610_v15, %v1282_v21 }
 0x6af   : > { %v1819_v16 = vpop.permute.xlu0 %1818 }
 0x6b0   : > { %v1712_v60 = vpop.permute.xlu1 %1711 }
 0x6b4   : > { %v1237_v11 = vpop.permute.xlu1 %1236 }
 0x6b5   : > { %v1285_v27 = vadd.f32 %v3069_v43, %v1237_v11  ;;  %v1880_v43 = vld [vmem:[%s3346_s18] sm:$0x3] }
 0x6b8   : > { %v1565_v14 = vpop.permute.xlu1 %1564 }
 0x6b9   : > { %v1613_v22 = vadd.f32 %v3166_v25, %v1565_v14 }
 0x6bb   : > { %v1697_v37 = vpop.f32.mrf.mxu1  ;;  %v1774_v39 = vpop.f32.mrf.mxu0  ;;  %v1617_v29 = vadd.f32 %v1613_v22, %v1285_v27 }
 0x6bc   : > { %v1775_v41 = vadd.f32 %v1774_v39, %v1725_v36  ;;  %v1698_v18 = vadd.f32 %v1697_v37, %v1648_v55  ;;  %v1824_v28 = vpop.permute.xlu1 %1823  ;;  %v1936_v36 = vpop.permute.xlu0 %1935 }
 0x6bd   : > { %v2394_v42 = vpop.f32.mrf.mxu1  ;;  %v2404_v54 = vpop.f32.mrf.mxu0 }
 0x6be   : > { %v1791_v45 = vadd.f32 %v1784_v40, %v1775_v41  ;;  %v1714_v17 = vadd.f32 %v1707_v12, %v1698_v18 }
 0x6bf   : > { %v1700_v58 = vpop.f32.mrf.mxu1  ;;  %v1777_v46 = vpop.f32.mrf.mxu0 }
 0x6c0   : > { %v2258_v48 = vmul.f32 -1.442695, %v1791_v45  ;;  %v1778_v49 = vadd.f32 %v1777_v46, %v1730_v44  ;;  %v1701_v57 = vadd.f32 %v1700_v58, %v1653_v56  ;;  %v1885_v37 = vpop.permute.xlu1 %1884 }
 0x6c1   : > { %v2405_v50 = vpop.f32.mrf.mxu0  ;;  %v2395_v51 = vpop.f32.mrf.mxu1 }
 0x6c2   : > { %2520 = vpow2.f32 %v2258_v48  ;;  %v1792_v52 = vadd.f32 %v1789_v47, %v1778_v49  ;;  %v1715_v62 = vadd.f32 %v1712_v60, %v1701_v57 }
 0x6c4   : > { %v2259_v53 = vmul.f32 -1.442695, %v1792_v52 }
 0x6c6   : > { %2522 = vpow2.f32 %v2259_v53 }
 0x6c7   : > { %2524 = vtanh.f32 %v1714_v17 }
 0x6cf   : > { %v2521_v59 = vpop.eup %2520 }
 0x6d0   : > { %v1801_v61 = vadd.f32 1.0, %v2521_v59 }
 0x6d2   : > { %2526 = vrcp.f32 %v1801_v61 }
 0x6d3   : > { %v2523_v63 = vpop.eup %2522  ;;  %2528 = vtanh.f32 %v1715_v62 }
 0x6d4   : > { %v1802_v1 = vadd.f32 1.0, %v2523_v63  ;;  %v2525_v2 = vpop.eup %2524 }
 0x6d6   : > { %2530 = vrcp.f32 %v1802_v1 }
 0x6df   : > { %v2527_v3 = vpop.eup %2526 }
 0x6e0   : > { %v2529_v35 = vpop.eup %2528  ;;  %v1807_v5 = vmul.f32 %v2527_v3, %v2525_v2 }
 0x6e3   : > { %v2531_v4 = vpop.eup %2530 }
 0x6e4   : > { %v1808_v6 = vmul.f32 %v2531_v4, %v2529_v35 }
 0x6e6   : > { %v1809_v7 = vpack.c.bf16 %v1808_v6, %v1807_v5 }
 0x6e8   : > { %2407 = vmatpush3.bf16.msra.mxu1 %v1809_v7 }
 0x6e9   : > { %2418 = vmatprep.subr.bf16.mxu1 %v2653_v0 }
 0x6eb   : > { %2409 = vmatmul.mubr.msk.bf16.vlgmr.msra.gmra.mxu1 %vm1176_vm6, %v2495_v9 }
 0x6ec   : > { %2420 = vmatprep.mubr.msk.bf16.mxu1 %vm2654_vm0, %v2653_v0 }
 0x7ab   : > { %v1868_v20 = vpop.f32.mrf.mxu1 }
 0x7ac   : > { %v1869_v23 = vadd.f32 %v1868_v20, %v1819_v16 }
 0x7ad   : > { %v2410_v24 = vpop.f32.mrf.mxu1 }
 0x7ae   : > { %v1875_v30 = vadd.f32 %v1869_v23, %v1616_v26 }
 0x7af   : > { %v1871_v0 = vpop.f32.mrf.mxu1 }
 0x7b0   : > { %v1872_v31 = vadd.f32 %v1871_v0, %v1824_v28  ;;  %v1877_v33 = vmul.f32 %v2876_v8, %v1875_v30 }
 0x7b1   : > { %v2411_v19 = vpop.f32.mrf.mxu1 }
 0x7b2   : > { %v1876_v32 = vadd.f32 %v1872_v31, %v1617_v29 }
 0x7b4   : > { %v1878_v38 = vmul.f32 %v2876_v8, %v1876_v32 }
 0x7b6   : > { %v1879_v25 = vpack.c.bf16 %v1878_v38, %v1877_v33 }
 0x7b8   : > { %2413 = vmatpush3.bf16.msra.mxu0 %v1879_v25  ;;  %2419 = vmatpush3.bf16.msra.mxu1 %v1879_v25 }
 0x7bb   : > { %2415 = vmatmul.mubr.msk.bf16.vlgmr.msra.gmra.mxu0 %vm1176_vm6, %v1880_v43  ;;  %2421 = vmatmul.mubr.msk.bf16.vlgmr.msra.gmra.mxu1 %vm1176_vm6, %v1931_v34 }
 0x87b   : > { %v1924_v39 = vpop.f32.mrf.mxu0  ;;  %v1975_v40 = vpop.f32.mrf.mxu1 }
 0x87c   : > { %v1925_v41 = vadd.f32 %v1924_v39, %v1885_v37  ;;  %v1976_v42 = vadd.f32 %v1975_v40, %v1936_v36 }
 0x87d   : > { %v2422_v54 = vpop.f32.mrf.mxu1  ;;  %v2416_v44 = vpop.f32.mrf.mxu0 }
 0x87e   : > { %v3219_v45 = vmul.f32 %v2876_v8, %v1925_v41  ;;  %v1981_v58 = vmul.f32 %v2876_v8, %v1976_v42 }
 0x87f   : > { %v1978_v46 = vpop.f32.mrf.mxu1  ;;  %v1927_v47 = vpop.f32.mrf.mxu0 }
 0x880   : > { %v1983_v8 = vmul.f32 1.442695, %v1981_v58  ;;  %1990 = vst [vmem:[%s781_s2] sm:$0xf] %v1981_v58  ;;  %1989 = vst [vmem:[%s774_s1] sm:$0xf] %v3219_v45 }
 0x881   : > { %v2423_v48 = vpop.f32.mrf.mxu1  ;;  %v2417_v49 = vpop.f32.mrf.mxu0 }
 0x882   : > { %2548 = shalt.err (!%p2545_p3)
}
 0x883   : > { %s2549_s25 = scalar_lea.hbm %s3226_s6, 64  ;;  %s2553_s10 = scalar_lea.hbm %s3351_s23, 128 }
 0x884   : > { %p2550_p4 = scmp.ne.s32.totalorder %s3226_s6, %s2549_s25  ;;  %p2554_p9 = scmp.lt.s32.totalorder %s3226_s6, %s3351_s23 }
 0x885   : > { %p2555_p10 = scmp.lt.s32.totalorder %s2553_s10, %s2549_s25 }
 0x886   : > { %p2551_p7 = pnand %p2550_p4, %p2830_p5 }
 0x887   : > { %p2556_p11 = por %p2555_p10, %p2554_p9 }
 0x888   : > { %p2552_p8 = pneg %p2551_p7 }
 0x88a   : > { %p2557_p12 = pnand %p2556_p11, %p2552_p8 }
 0x88c   : > { %2560 = shalt.err (!%p2557_p12)
}
 0x88d   : > { %2425 = dma.vmem_to_hbm [thread:$0]  (%p2830_p5), %s3228_s27, 64, %s3226_s6, %s3239_s8   ;;  %2532 = vpow2.f32 %v1983_v8 }
 0x88e   : > { %s2561_s5 = scalar_lea.vmem %s3236_s30, 64  ;;  %s2663_s11 = smov [#allocation6]  }
 0x88f   : > { %p2562_p13 = scmp.ne.s32.totalorder %s3236_s30, %s2561_s5  ;;  %s2565_s12 = sshll.u32 %s2663_s11, 4  ;;  %s2566_s12 = int_to_ptr.vmem [resolvable:$false] %s2565_s12 }
 0x890   : > { %s2567_s4 = scalar_lea.vmem %s2566_s12, 128  ;;  %p2568_p2 = scmp.lt.s32.totalorder %s3236_s30, %s2566_s12 }
 0x891   : > { %p2563_p0 = pnand %p2562_p13, %p2830_p5  ;;  %p2569_p3 = scmp.lt.s32.totalorder %s2567_s4, %s2561_s5 }
 0x893   : > { %p2564_p1 = pneg %p2563_p0  ;;  %p2570_p4 = por %p2569_p3, %p2568_p2 }
 0x895   : > { %p2571_p7 = pnand %p2570_p4, %p2564_p1 }
 0x897   : > { %2574 = shalt.err (!%p2571_p7)
}
 0x898   : > { %s2575_s27 = scalar_lea.hbm %s3234_s9, 64  ;;  %s2579_s25 = scalar_lea.hbm %s3411_s7, 128 }
 0x899   : > { %p2576_p8 = scmp.ne.s32.totalorder %s3234_s9, %s2575_s27  ;;  %p2580_p11 = scmp.lt.s32.totalorder %s3234_s9, %s3411_s7 }
 0x89a   : > { %p2581_p12 = scmp.lt.s32.totalorder %s2579_s25, %s2575_s27 }
 0x89b   : > { %p2577_p9 = pnand %p2576_p8, %p2830_p5 }
 0x89c   : > { %p2582_p13 = por %p2581_p12, %p2580_p11 }
 0x89d   : > { %p2578_p10 = pneg %p2577_p9 }
 0x89f   : > { %p2583_p0 = pnand %p2582_p13, %p2578_p10 }
 0x8a1   : > { %2586 = shalt.err (!%p2583_p0)
}
 0x8a2   : > { %s3412_s10 = sld [smem:[#allocation15_spill]]  ;;  %s3413_s5 = sshll.u32 %s2848_s0, 2  ;;  %v2533_v51 = vpop.eup %2532 }
 0x8a3   : > { %2426 = dma.vmem_to_hbm [thread:$0]  (%p2830_p5), %s3236_s30, 64, %s3234_s9, %s3239_s8  }
 0x8a4   : > { %s3414_s4 = sld [smem:[#allocation18_spill]]  ;;  %s767_s6 = scalar_lea.vmem [#allocation2], %s3210_s29 }
 0x8a5   : > { %s2015_s28 = sshll.u32 %s767_s6, 4  ;;  %s3415_s2 = sld [smem:[#allocation29_spill]]  ;;  %s2016_s28 = int_to_ptr.vmem [resolvable:$true] %s2015_s28 }
 0x8a6   : > { %s3416_s9 = sand.u32 1, %s2643_s26   ;;  %s2587_s30 = scalar_lea.vmem %s2016_s28, 64 }
 0x8a7   : > { %s1992_s0 = scalar_lea.sflag [#allocation3], %s3416_s9  ;;  %p2588_p1 = scmp.ne.s32.totalorder %s2016_s28, %s2587_s30 }
 0x8a8   : > { %v2534_v55 = vld [vmem:[%s3412_s10] ss:$0 sm:$0xff]  ;;  %s2664_s8 = smov [#allocation2]  }
 0x8a9   : > { %p2589_p2 = pnand %p2588_p1, %p2830_p5  ;;  %s2591_s29 = sshll.u32 %s2664_s8, 4  ;;  %s2592_s29 = int_to_ptr.vmem [resolvable:$false] %s2591_s29 }
 0x8aa   : > { %s792_s27 = scalar_lea.vmem %s3414_s4, %s3413_s5  ;;  %s2593_s5 = scalar_lea.vmem %s2592_s29, 128 }
 0x8ab   : > { %v1982_v50 = vld [vmem:[%s792_s27] sm:$0xf]  ;;  %s2013_s7 = scalar_lea.hbm %s3415_s2, %s3214_s22  ;;  %p2590_p3 = pneg %p2589_p2 }
 0x8ac   : > { %v1985_v52 = vmul.f32 %v2533_v51, %v1982_v50  ;;  %p2594_p4 = scmp.lt.s32.totalorder %s2016_s28, %s2592_s29  ;;  %p2595_p7 = scmp.lt.s32.totalorder %s2593_s5, %s2587_s30 }
 0x8ae   : > { %v1986_v53 = vadd.f32 %v1985_v52, %v3219_v45  ;;  %p2596_p8 = por %p2595_p7, %p2594_p4 }
 0x8b0   : > { %v1987_v56 = vmul.f32 %v2534_v55, %v1986_v53  ;;  %p2597_p9 = pnand %p2596_p8, %p2590_p3 }
 0x8b2   : > { %1988 = vst [vmem:[%s767_s6] sm:$0xf] %v1987_v56 }
 0x8b3   : > { %2600 = shalt.err (!%p2597_p9)
}
 0x8b4   : > { %s2601_s10 = scalar_lea.hbm %s2013_s7, 64  ;;  %s2605_s12 = scalar_lea.hbm %s3415_s2, 128 }
 0x8b5   : > { %p2602_p10 = scmp.ne.s32.totalorder %s2013_s7, %s2601_s10  ;;  %p2606_p13 = scmp.lt.s32.totalorder %s2013_s7, %s3415_s2 }
 0x8b6   : > { %p2607_p0 = scmp.lt.s32.totalorder %s2605_s12, %s2601_s10 }
 0x8b7   : > { %p2603_p11 = pnand %p2602_p10, %p2830_p5 }
 0x8b8   : > { %p2608_p1 = por %p2607_p0, %p2606_p13 }
 0x8b9   : > { %p2604_p12 = pneg %p2603_p11 }
 0x8bb   : > { %p2609_p2 = pnand %p2608_p1, %p2604_p12 }
 0x8bd   : > { %2612 = shalt.err (!%p2609_p2)
}
 0x8be   : > { %2424 = dma.vmem_to_hbm [thread:$0]  (%p2830_p5), %s2016_s28, 64, %s2013_s7, %s1992_s0  }
 0x8bf PF: > { %s3417_s6 = sld [smem:[#allocation11_spill]] }
 0x8c0   : > { %s3418_s25 = sld [smem:[#allocation9_spill]] }
 0x8c5   : > { %p2440_p3 = scmp.ge.s32.totalorder %s3417_s6, 2 }
 0x8c6   : > { %s2053_s9 = sand.u32 1, %s3418_s25  }
 0x8c7   : > { %p2431_p4 = pnand %p2440_p3, %p2834_p6  ;;  %s2054_s30 = scalar_lea.sflag [#allocation3], %s2053_s9 }
 0x8c9   : > { %p2432_p7 = pneg %p2431_p4 }
 0x8cb   : > { %2630 = dma.done.wait (%p2432_p7), %s2054_s30, 64  }
 0x8cc   : > { %2632 = vsyncadd (%p2432_p7), %s2054_s30, 4294967232  ;;  %s3420_s8 = sadd.s32 4294967294, %s3417_s6  }
 0x8cd   : > { %s2062_s29 = sand.u32 1, %s3420_s8  }
 0x8ce   : > { %s2063_s5 = scalar_lea.sflag [#allocation5], %s2062_s29 }
 0x8cf   : > { %2634 = dma.done.wait (%p2432_p7), %s2063_s5, 128  }
 0x8d0   : > { %2636 = vsyncadd (%p2432_p7), %s2063_s5, 4294967168  ;;  %s3421_s28 = sld [smem:[#allocation12_spill]]  ;;  %s3424_s5 = smov %s2643_s26 }
 0x8d1   : > { %s3422_s3 = sld [smem:[#allocation10_spill]] }
 0x8d2   : > { %s3423_s27 = sld [smem:[#allocation13_spill]] }
 0x8d6   : > { %p38_p5 = scmp.ge.s32.totalorder %s3421_s28, 4  }
 0x8d7   : > { %s3425_s26 = smov %s3422_s3 }
 0x8d8   :  { %40 = sbr.rel (!%p38_p5) target bundleno = 21 (0x15), region = 198 }
 0x8dd   :  { %2077 = vsyncpa [#allocation3], 1 }
 0x8de   :  { %2079 = vsyncpa [#allocation3 + $0x1], 1 }
 0x8df   :  { %2080 = vsyncpa [#allocation5], 1 }
 0x8e0   :  { %2082 = vsyncpa [#allocation5 + $0x1], 1 }

</bundles_post_ra>
